<compile_context>
chip_gen: v6e
topology: v6e:2x2x1
jax: 0.10.0
libtpu: 0.0.40
codegen_flags: <defaults>
</compile_context>

<pallas_src>
import jax
import jax.numpy as jnp
from jax import lax
from jax.experimental import pallas as pl
from jax.experimental.pallas import tpu as pltpu

LEAKY_SLOPE = 0.2

# Fixed block structure from the PyTorch module instantiation.
K1, K2, K3 = 8, 5, 3
PAD_LEFT, PAD_RIGHT = 4, 3          # ConstantPad1d((4, 3), 0)


# ----------------------------- fused Pallas kernel --------------------------

def make_kernel(n_blocks, filters, length):
    """One grid step == one batch sample: all ResNet blocks + pool + linear."""
    L = length
    LEFT1 = PAD_LEFT + 1                               # ConstantPad1d left + conv pad 1
    LpA = L + PAD_LEFT + PAD_RIGHT + 2                 # padded length for k=8 conv
    Lo1 = L + 2                                        # k=8 conv output length
    LpB = Lo1 + 2                                      # padded length for k=5 conv
    LpC = L + 2                                        # padded length for k=3 conv

    def leaky(v):
        # LeakyReLU(0.2): max(x, 0.2*x)  (2 VALU ops instead of cmp+select)
        return jnp.maximum(v, LEAKY_SLOPE * v)

    def stage(buf, act, left, l_in, c, l_pad):
        # Write activation into a reusable padded VMEM buffer.
        # Only the halo columns are zeroed; the interior is fully overwritten.
        right = l_pad - left - l_in
        buf[0:c, 0:left] = jnp.zeros((c, left), buf.dtype)
        buf[0:c, left + l_in:l_pad] = jnp.zeros((c, right), buf.dtype)
        buf[0:c, left:left + l_in] = act

    def conv(buf, w_ref, b_ref, ksize, cin, l_out):
        # Tap accumulation: K matmuls of (Cout,Cin) x (Cin,l_out), f32 acc.
        # bf16 MXU operands, no im2col patch materialization.
        acc = b_ref[...] + jnp.dot(
            w_ref[0], buf[0:cin, 0:l_out].astype(jnp.bfloat16),
            preferred_element_type=jnp.float32)
        for k in range(1, ksize):
            acc = acc + jnp.dot(
                w_ref[k], buf[0:cin, k:k + l_out].astype(jnp.bfloat16),
                preferred_element_type=jnp.float32)
        return acc

    def kernel(*refs):
        idx = 0
        x_ref = refs[idx]; idx += 1                    # (1, C0, L) f32
        blk = []
        for _ in range(n_blocks):
            blk.append(refs[idx:idx + 8]); idx += 8    # w1,b1,w2,b2,w3,b3,wr,br
        wh_ref = refs[idx]; bh_ref = refs[idx + 1]; idx += 2
        o_ref = refs[idx]; idx += 1                    # (1, classes, 1) f32
        bufA, bufB, bufC = refs[idx], refs[idx + 1], refs[idx + 2]

        act = x_ref[0]                                 # (C0, L) f32

        for bi in range(n_blocks):
            w1, b1, w2, b2, w3, b3, wr, br = blk[bi]
            cin, cout = filters[bi], filters[bi + 1]

            # residual path: 1x1 conv == plain matmul (bf16 MXU, f32 acc)
            act_bf = act.astype(jnp.bfloat16)
            res = jnp.dot(wr[0], act_bf,
                          preferred_element_type=jnp.float32) + br[...]

            # main path (reused padded scratch buffers, zero-halo staging)
            stage(bufA, act, LEFT1, L, cin, LpA)
            h = leaky(conv(bufA, w1, b1, K1, cin, Lo1))        # (Cout, L+2)
            stage(bufB, h, 1, Lo1, cout, LpB)
            h = leaky(conv(bufB, w2, b2, K2, cout, L))         # (Cout, L)
            stage(bufC, h, 1, L, cout, LpC)
            h = conv(bufC, w3, b3, K3, cout, L)                # (Cout, L)

            act = h + res                                      # (Cout, L) f32

        # fused head: AdaptiveAvgPool1d(1) as a lane reduction (no averaging
        # matrix / no extra HBM traffic), then the Linear layer.
        pooled = jnp.sum(act, axis=-1, keepdims=True) * (1.0 / L)   # (C_last, 1)
        logits = jnp.dot(wh_ref[...], pooled.astype(jnp.bfloat16),
                         preferred_element_type=jnp.float32) + bh_ref[...]
        o_ref[...] = logits[None].astype(o_ref.dtype)           # (1, classes, 1)

    scratch = [
        pltpu.VMEM((max(filters[:-1]), LpA), jnp.float32),       # reused across blocks
        pltpu.VMEM((max(filters[1:]), LpB), jnp.float32),
        pltpu.VMEM((max(filters[1:]), LpC), jnp.float32),
    ]
    return kernel, scratch


# ----------------------------- wrapper ---------------------------------------

def _const_spec(arr):
    """Full-array block, constant index map -> VMEM-resident across the grid."""
    if arr.ndim == 2:
        return pl.BlockSpec(arr.shape, lambda n: (0, 0))
    return pl.BlockSpec(arr.shape, lambda n: (0, 0, 0))


def model_forward(x, block_params, head_params):
    N, C0, L = x.shape
    classes = head_params["w_bf"].shape[0]
    filters = [C0] + [p["b1"].shape[0] for p in block_params]
    n_blocks = len(block_params)

    kernel, scratch_shapes = make_kernel(n_blocks, filters, L)

    flat = [x]
    in_specs = [pl.BlockSpec((1, C0, L), lambda n: (n, 0, 0))]
    for p in block_params:
        for key in ("w1_koi", "b1", "w2_koi", "b2", "w3_koi", "b3",
                    "wr_koi", "br"):
            arr = p[key]
            flat.append(arr)
            in_specs.append(_const_spec(arr))
    flat += [head_params["w_bf"], head_params["b_col"]]
    in_specs += [_const_spec(head_params["w_bf"]),
                 _const_spec(head_params["b_col"])]

    out = pl.pallas_call(
        kernel,
        out_shape=jax.ShapeDtypeStruct((N, classes, 1), jnp.float32),
        grid_spec=pltpu.PrefetchScalarGridSpec(
            num_scalar_prefetch=0,
            grid=(N,),
            in_specs=in_specs,
            out_specs=pl.BlockSpec((1, classes, 1), lambda n: (n, 0, 0)),
            scratch_shapes=scratch_shapes),
        compiler_params=pltpu.CompilerParams(
            dimension_semantics=("parallel",),          # 2nd TC on v7x
            vmem_limit_bytes=32 * 1024 * 1024),
    )(*flat)
    return out[:, :, 0]                                  # (N, classes)


# ----------------------------- parameters ------------------------------------

def spectral_normalize(w):
    """Exact spectral normalization of a conv weight (Cout, Cin, K)."""
    mat = w.reshape(w.shape[0], -1)
    sigma = jnp.linalg.svd(mat, compute_uv=False)[0]
    return w / sigma


def init_block(key, cin, cout):
    ks = jax.random.split(key, 8)

    def rnd(k, shape):
        return 0.1 * jax.random.normal(k, shape, jnp.float32)

    p = {}
    specs = [("w1", "b1", K1, cin), ("w2", "b2", K2, cout),
             ("w3", "b3", K3, cout), ("wr", "br", 1, cin)]
    for i, (wn, bn, ksz, ci) in enumerate(specs):
        w = spectral_normalize(rnd(ks[2 * i], (cout, ci, ksz)))  # (Cout, Cin, K)
        w_bf = w.astype(jnp.bfloat16)                            # bf16 MXU weights
        p[wn + "_oih"] = w_bf                                    # reference (O, I, K)
        p[wn + "_koi"] = jnp.transpose(w_bf, (2, 0, 1))          # kernel (K, O, I)
        p[bn] = rnd(ks[2 * i + 1], (cout,)).reshape(cout, 1)     # f32 bias column
    return p


def init_head(key, c_last, classes):
    k1, k2 = jax.random.split(key)
    w = 0.1 * jax.random.normal(k1, (classes, c_last), jnp.float32)
    b = 0.1 * jax.random.normal(k2, (classes,), jnp.float32)
    return {"w_bf": w.astype(jnp.bfloat16), "b_col": b.reshape(classes, 1)}


# ----------------------------- pure-JAX reference -----------------------------

def ref_conv1d(x_f32, w_oih_bf, b_col, pad):
    out = lax.conv_general_dilated(
        x_f32.astype(jnp.bfloat16), w_oih_bf, window_strides=(1,),
        padding=[(pad, pad)], dimension_numbers=("NCH", "OIH", "NCH"),
        preferred_element_type=jnp.float32)
    return out + b_col[None]


def ref_block(x, p):
    res = ref_conv1d(x, p["wr_oih"], p["br"], 0)
    h = jnp.pad(x, ((0, 0), (0, 0), (PAD_LEFT, PAD_RIGHT)))
    h = ref_conv1d(h, p["w1_oih"], p["b1"], 1)
    h = jnp.maximum(h, LEAKY_SLOPE * h)
    h = ref_conv1d(h, p["w2_oih"], p["b2"], 1)
    h = jnp.maximum(h, LEAKY_SLOPE * h)
    h = ref_conv1d(h, p["w3_oih"], p["b3"], 1)
    return h + res


def ref_forward(x, block_params, head_params):
    L = x.shape[-1]
    for p in block_params:
        x = ref_block(x, p)
    pooled = jnp.sum(x, axis=2) * (1.0 / L)                       # (N, C_last)
    logits = jnp.dot(pooled.astype(jnp.bfloat16), head_params["w_bf"].T,
                     preferred_element_type=jnp.float32)
    return logits + head_params["b_col"].reshape(1, -1)


# ----------------------------- main -------------------------------------------

if __name__ == "__main__":
    # ResNet stack with layer_filters=[4, 8], classes=3; 1-channel input.
    layer_filters = [4, 8]
    classes = 3
    filters = [1] + layer_filters
    N, L = 2, 16

    key = jax.random.PRNGKey(0)
    keys = jax.random.split(key, len(layer_filters) + 2)
    block_params = [init_block(keys[i], filters[i], filters[i + 1])
                    for i in range(len(layer_filters))]
    head_params = init_head(keys[-2], filters[-1], classes)

    x = jax.random.normal(keys[-1], (N, 1, L), jnp.float32)     # (N, C=1, L)

    fwd = jax.jit(lambda xx: model_forward(xx, block_params, head_params))
    out = jax.block_until_ready(fwd(x))
    ref = jax.block_until_ready(ref_forward(x, block_params, head_params))

    assert out.shape == (N, classes), out.shape
    assert jnp.allclose(out, ref, atol=1e-3, rtol=1e-3), (out, ref)
    print("KERNEL_OK")
</pallas_src>

<mosaic_0001>
module attributes {stable_mosaic.version = 11 : i64} {
  func.func @kernel(%arg0: i32, %arg1: memref<1x1x16xf32, #tpu.memory_space<vmem>>, %arg2: memref<8x4x1xbf16, #tpu.memory_space<vmem>>, %arg3: memref<4x1xf32, #tpu.memory_space<vmem>>, %arg4: memref<5x4x4xbf16, #tpu.memory_space<vmem>>, %arg5: memref<4x1xf32, #tpu.memory_space<vmem>>, %arg6: memref<3x4x4xbf16, #tpu.memory_space<vmem>>, %arg7: memref<4x1xf32, #tpu.memory_space<vmem>>, %arg8: memref<1x4x1xbf16, #tpu.memory_space<vmem>>, %arg9: memref<4x1xf32, #tpu.memory_space<vmem>>, %arg10: memref<8x8x4xbf16, #tpu.memory_space<vmem>>, %arg11: memref<8x1xf32, #tpu.memory_space<vmem>>, %arg12: memref<5x8x8xbf16, #tpu.memory_space<vmem>>, %arg13: memref<8x1xf32, #tpu.memory_space<vmem>>, %arg14: memref<3x8x8xbf16, #tpu.memory_space<vmem>>, %arg15: memref<8x1xf32, #tpu.memory_space<vmem>>, %arg16: memref<1x8x4xbf16, #tpu.memory_space<vmem>>, %arg17: memref<8x1xf32, #tpu.memory_space<vmem>>, %arg18: memref<3x8xbf16, #tpu.memory_space<vmem>>, %arg19: memref<3x1xf32, #tpu.memory_space<vmem>>, %arg20: memref<1x3x1xf32, #tpu.memory_space<vmem>>, %arg21: memref<4x25xf32, #tpu.memory_space<vmem>>, %arg22: memref<8x20xf32, #tpu.memory_space<vmem>>, %arg23: memref<8x18xf32, #tpu.memory_space<vmem>>) attributes {dimension_semantics = [#tpu.dimension_semantics<parallel>], iteration_bounds = array<i64: 2>, scalar_prefetch = 0 : i64, scratch_operands = 3 : i64, tpu.core_type = #tpu.core_type<tc>, window_params = [{transform_indices = @transform_0, window_bounds = array<i64: 1, 1, 16>}, {pipeline_mode = #tpu.pipeline_mode<synchronous>, transform_indices = @transform_1, window_bounds = array<i64: 8, 4, 1>}, {pipeline_mode = #tpu.pipeline_mode<synchronous>, transform_indices = @transform_2, window_bounds = array<i64: 4, 1>}, {pipeline_mode = #tpu.pipeline_mode<synchronous>, transform_indices = @transform_3, window_bounds = array<i64: 5, 4, 4>}, {pipeline_mode = #tpu.pipeline_mode<synchronous>, transform_indices = @transform_4, window_bounds = array<i64: 4, 1>}, {pipeline_mode = #tpu.pipeline_mode<synchronous>, transform_indices = @transform_5, window_bounds = array<i64: 3, 4, 4>}, {pipeline_mode = #tpu.pipeline_mode<synchronous>, transform_indices = @transform_6, window_bounds = array<i64: 4, 1>}, {pipeline_mode = #tpu.pipeline_mode<synchronous>, transform_indices = @transform_7, window_bounds = array<i64: 1, 4, 1>}, {pipeline_mode = #tpu.pipeline_mode<synchronous>, transform_indices = @transform_8, window_bounds = array<i64: 4, 1>}, {pipeline_mode = #tpu.pipeline_mode<synchronous>, transform_indices = @transform_9, window_bounds = array<i64: 8, 8, 4>}, {pipeline_mode = #tpu.pipeline_mode<synchronous>, transform_indices = @transform_10, window_bounds = array<i64: 8, 1>}, {pipeline_mode = #tpu.pipeline_mode<synchronous>, transform_indices = @transform_11, window_bounds = array<i64: 5, 8, 8>}, {pipeline_mode = #tpu.pipeline_mode<synchronous>, transform_indices = @transform_12, window_bounds = array<i64: 8, 1>}, {pipeline_mode = #tpu.pipeline_mode<synchronous>, transform_indices = @transform_13, window_bounds = array<i64: 3, 8, 8>}, {pipeline_mode = #tpu.pipeline_mode<synchronous>, transform_indices = @transform_14, window_bounds = array<i64: 8, 1>}, {pipeline_mode = #tpu.pipeline_mode<synchronous>, transform_indices = @transform_15, window_bounds = array<i64: 1, 8, 4>}, {pipeline_mode = #tpu.pipeline_mode<synchronous>, transform_indices = @transform_16, window_bounds = array<i64: 8, 1>}, {pipeline_mode = #tpu.pipeline_mode<synchronous>, transform_indices = @transform_17, window_bounds = array<i64: 3, 8>}, {pipeline_mode = #tpu.pipeline_mode<synchronous>, transform_indices = @transform_18, window_bounds = array<i64: 3, 1>}, {transform_indices = @transform_19, window_bounds = array<i64: 1, 3, 1>}]} {
    %c0 = arith.constant 0 : index
    %c0_0 = arith.constant 0 : index
    %c0_1 = arith.constant 0 : index
    %0 = vector.load %arg1[%c0, %c0_0, %c0_1] : memref<1x1x16xf32, #tpu.memory_space<vmem>>, vector<1x1x16xf32>
    %1 = vector.shape_cast %0 : vector<1x1x16xf32> to vector<1x16xf32>
    %2 = arith.truncf %1 : vector<1x16xf32> to vector<1x16xbf16>
    %c0_2 = arith.constant 0 : index
    %c0_3 = arith.constant 0 : index
    %c0_4 = arith.constant 0 : index
    %3 = vector.load %arg8[%c0_2, %c0_3, %c0_4] : memref<1x4x1xbf16, #tpu.memory_space<vmem>>, vector<1x4x1xbf16>
    %4 = vector.shape_cast %3 : vector<1x4x1xbf16> to vector<4x1xbf16>
    %cst = arith.constant dense<0.000000e+00> : vector<4x16xf32>
    %5 = tpu.matmul %4, %2, %cst {dimension_numbers = #tpu.dot_dimension_numbers<[1], [0], [0], [1], [0, 0, 1, 1], [], []>} : vector<4x1xbf16>, vector<1x16xbf16>, vector<4x16xf32> -> vector<4x16xf32>
    %c0_5 = arith.constant 0 : index
    %c0_6 = arith.constant 0 : index
    %6 = vector.load %arg9[%c0_5, %c0_6] : memref<4x1xf32, #tpu.memory_space<vmem>>, vector<4x1xf32>
    %7 = vector.broadcast %6 : vector<4x1xf32> to vector<4x16xf32>
    %8 = arith.addf %5, %7 : vector<4x16xf32>
    %cst_7 = arith.constant 0.000000e+00 : f32
    %9 = vector.broadcast %cst_7 : f32 to vector<1x5xf32>
    %c0_8 = arith.constant 0 : index
    %c0_9 = arith.constant 0 : index
    %10 = vector.load %arg21[%c0_8, %c0_9] : memref<4x25xf32, #tpu.memory_space<vmem>>, vector<1x5xf32>
    tpu.vector_store %arg21[%c0_8, %c0_9], %9 {strides = array<i32>} : memref<4x25xf32, #tpu.memory_space<vmem>>, vector<1x5xf32>,
    %cst_10 = arith.constant 0.000000e+00 : f32
    %11 = vector.broadcast %cst_10 : f32 to vector<1x4xf32>
    %c0_11 = arith.constant 0 : index
    %c21 = arith.constant 21 : index
    %12 = vector.load %arg21[%c0_11, %c21] : memref<4x25xf32, #tpu.memory_space<vmem>>, vector<1x4xf32>
    tpu.vector_store %arg21[%c0_11, %c21], %11 {strides = array<i32>} : memref<4x25xf32, #tpu.memory_space<vmem>>, vector<1x4xf32>,
    %c0_12 = arith.constant 0 : index
    %c5 = arith.constant 5 : index
    %13 = vector.load %arg21[%c0_12, %c5] : memref<4x25xf32, #tpu.memory_space<vmem>>, vector<1x16xf32>
    tpu.vector_store %arg21[%c0_12, %c5], %1 {strides = array<i32>} : memref<4x25xf32, #tpu.memory_space<vmem>>, vector<1x16xf32>,
    %c0_13 = arith.constant 0 : index
    %c0_14 = arith.constant 0 : index
    %14 = vector.load %arg3[%c0_13, %c0_14] : memref<4x1xf32, #tpu.memory_space<vmem>>, vector<4x1xf32>
    %c0_15 = arith.constant 0 : index
    %c0_16 = arith.constant 0 : index
    %c0_17 = arith.constant 0 : index
    %15 = vector.load %arg2[%c0_15, %c0_16, %c0_17] : memref<8x4x1xbf16, #tpu.memory_space<vmem>>, vector<1x4x1xbf16>
    %16 = vector.shape_cast %15 : vector<1x4x1xbf16> to vector<4x1xbf16>
    %c0_18 = arith.constant 0 : index
    %c0_19 = arith.constant 0 : index
    %17 = vector.load %arg21[%c0_18, %c0_19] : memref<4x25xf32, #tpu.memory_space<vmem>>, vector<1x18xf32>
    %18 = arith.truncf %17 : vector<1x18xf32> to vector<1x18xbf16>
    %cst_20 = arith.constant dense<0.000000e+00> : vector<4x18xf32>
    %19 = tpu.matmul %16, %18, %cst_20 {dimension_numbers = #tpu.dot_dimension_numbers<[1], [0], [0], [1], [0, 0, 1, 1], [], []>} : vector<4x1xbf16>, vector<1x18xbf16>, vector<4x18xf32> -> vector<4x18xf32>
    %20 = vector.broadcast %14 : vector<4x1xf32> to vector<4x18xf32>
    %21 = arith.addf %20, %19 : vector<4x18xf32>
    %c1 = arith.constant 1 : index
    %c0_21 = arith.constant 0 : index
    %c0_22 = arith.constant 0 : index
    %22 = vector.load %arg2[%c1, %c0_21, %c0_22] : memref<8x4x1xbf16, #tpu.memory_space<vmem>>, vector<1x4x1xbf16>
    %23 = vector.shape_cast %22 : vector<1x4x1xbf16> to vector<4x1xbf16>
    %c0_23 = arith.constant 0 : index
    %c1_24 = arith.constant 1 : index
    %24 = vector.load %arg21[%c0_23, %c1_24] : memref<4x25xf32, #tpu.memory_space<vmem>>, vector<1x18xf32>
    %25 = arith.truncf %24 : vector<1x18xf32> to vector<1x18xbf16>
    %cst_25 = arith.constant dense<0.000000e+00> : vector<4x18xf32>
    %26 = tpu.matmul %23, %25, %cst_25 {dimension_numbers = #tpu.dot_dimension_numbers<[1], [0], [0], [1], [0, 0, 1, 1], [], []>} : vector<4x1xbf16>, vector<1x18xbf16>, vector<4x18xf32> -> vector<4x18xf32>
    %27 = arith.addf %21, %26 : vector<4x18xf32>
    %c2 = arith.constant 2 : index
    %c0_26 = arith.constant 0 : index
    %c0_27 = arith.constant 0 : index
    %28 = vector.load %arg2[%c2, %c0_26, %c0_27] : memref<8x4x1xbf16, #tpu.memory_space<vmem>>, vector<1x4x1xbf16>
    %29 = vector.shape_cast %28 : vector<1x4x1xbf16> to vector<4x1xbf16>
    %c0_28 = arith.constant 0 : index
    %c2_29 = arith.constant 2 : index
    %30 = vector.load %arg21[%c0_28, %c2_29] : memref<4x25xf32, #tpu.memory_space<vmem>>, vector<1x18xf32>
    %31 = arith.truncf %30 : vector<1x18xf32> to vector<1x18xbf16>
    %cst_30 = arith.constant dense<0.000000e+00> : vector<4x18xf32>
    %32 = tpu.matmul %29, %31, %cst_30 {dimension_numbers = #tpu.dot_dimension_numbers<[1], [0], [0], [1], [0, 0, 1, 1], [], []>} : vector<4x1xbf16>, vector<1x18xbf16>, vector<4x18xf32> -> vector<4x18xf32>
    %33 = arith.addf %27, %32 : vector<4x18xf32>
    %c3 = arith.constant 3 : index
    %c0_31 = arith.constant 0 : index
    %c0_32 = arith.constant 0 : index
    %34 = vector.load %arg2[%c3, %c0_31, %c0_32] : memref<8x4x1xbf16, #tpu.memory_space<vmem>>, vector<1x4x1xbf16>
    %35 = vector.shape_cast %34 : vector<1x4x1xbf16> to vector<4x1xbf16>
    %c0_33 = arith.constant 0 : index
    %c3_34 = arith.constant 3 : index
    %36 = vector.load %arg21[%c0_33, %c3_34] : memref<4x25xf32, #tpu.memory_space<vmem>>, vector<1x18xf32>
    %37 = arith.truncf %36 : vector<1x18xf32> to vector<1x18xbf16>
    %cst_35 = arith.constant dense<0.000000e+00> : vector<4x18xf32>
    %38 = tpu.matmul %35, %37, %cst_35 {dimension_numbers = #tpu.dot_dimension_numbers<[1], [0], [0], [1], [0, 0, 1, 1], [], []>} : vector<4x1xbf16>, vector<1x18xbf16>, vector<4x18xf32> -> vector<4x18xf32>
    %39 = arith.addf %33, %38 : vector<4x18xf32>
    %c4 = arith.constant 4 : index
    %c0_36 = arith.constant 0 : index
    %c0_37 = arith.constant 0 : index
    %40 = vector.load %arg2[%c4, %c0_36, %c0_37] : memref<8x4x1xbf16, #tpu.memory_space<vmem>>, vector<1x4x1xbf16>
    %41 = vector.shape_cast %40 : vector<1x4x1xbf16> to vector<4x1xbf16>
    %c0_38 = arith.constant 0 : index
    %c4_39 = arith.constant 4 : index
    %42 = vector.load %arg21[%c0_38, %c4_39] : memref<4x25xf32, #tpu.memory_space<vmem>>, vector<1x18xf32>
    %43 = arith.truncf %42 : vector<1x18xf32> to vector<1x18xbf16>
    %cst_40 = arith.constant dense<0.000000e+00> : vector<4x18xf32>
    %44 = tpu.matmul %41, %43, %cst_40 {dimension_numbers = #tpu.dot_dimension_numbers<[1], [0], [0], [1], [0, 0, 1, 1], [], []>} : vector<4x1xbf16>, vector<1x18xbf16>, vector<4x18xf32> -> vector<4x18xf32>
    %45 = arith.addf %39, %44 : vector<4x18xf32>
    %c5_41 = arith.constant 5 : index
    %c0_42 = arith.constant 0 : index
    %c0_43 = arith.constant 0 : index
    %46 = vector.load %arg2[%c5_41, %c0_42, %c0_43] : memref<8x4x1xbf16, #tpu.memory_space<vmem>>, vector<1x4x1xbf16>
    %47 = vector.shape_cast %46 : vector<1x4x1xbf16> to vector<4x1xbf16>
    %c0_44 = arith.constant 0 : index
    %c5_45 = arith.constant 5 : index
    %48 = vector.load %arg21[%c0_44, %c5_45] : memref<4x25xf32, #tpu.memory_space<vmem>>, vector<1x18xf32>
    %49 = arith.truncf %48 : vector<1x18xf32> to vector<1x18xbf16>
    %cst_46 = arith.constant dense<0.000000e+00> : vector<4x18xf32>
    %50 = tpu.matmul %47, %49, %cst_46 {dimension_numbers = #tpu.dot_dimension_numbers<[1], [0], [0], [1], [0, 0, 1, 1], [], []>} : vector<4x1xbf16>, vector<1x18xbf16>, vector<4x18xf32> -> vector<4x18xf32>
    %51 = arith.addf %45, %50 : vector<4x18xf32>
    %c6 = arith.constant 6 : index
    %c0_47 = arith.constant 0 : index
    %c0_48 = arith.constant 0 : index
    %52 = vector.load %arg2[%c6, %c0_47, %c0_48] : memref<8x4x1xbf16, #tpu.memory_space<vmem>>, vector<1x4x1xbf16>
    %53 = vector.shape_cast %52 : vector<1x4x1xbf16> to vector<4x1xbf16>
    %c0_49 = arith.constant 0 : index
    %c6_50 = arith.constant 6 : index
    %54 = vector.load %arg21[%c0_49, %c6_50] : memref<4x25xf32, #tpu.memory_space<vmem>>, vector<1x18xf32>
    %55 = arith.truncf %54 : vector<1x18xf32> to vector<1x18xbf16>
    %cst_51 = arith.constant dense<0.000000e+00> : vector<4x18xf32>
    %56 = tpu.matmul %53, %55, %cst_51 {dimension_numbers = #tpu.dot_dimension_numbers<[1], [0], [0], [1], [0, 0, 1, 1], [], []>} : vector<4x1xbf16>, vector<1x18xbf16>, vector<4x18xf32> -> vector<4x18xf32>
    %57 = arith.addf %51, %56 : vector<4x18xf32>
    %c7 = arith.constant 7 : index
    %c0_52 = arith.constant 0 : index
    %c0_53 = arith.constant 0 : index
    %58 = vector.load %arg2[%c7, %c0_52, %c0_53] : memref<8x4x1xbf16, #tpu.memory_space<vmem>>, vector<1x4x1xbf16>
    %59 = vector.shape_cast %58 : vector<1x4x1xbf16> to vector<4x1xbf16>
    %c0_54 = arith.constant 0 : index
    %c7_55 = arith.constant 7 : index
    %60 = vector.load %arg21[%c0_54, %c7_55] : memref<4x25xf32, #tpu.memory_space<vmem>>, vector<1x18xf32>
    %61 = arith.truncf %60 : vector<1x18xf32> to vector<1x18xbf16>
    %cst_56 = arith.constant dense<0.000000e+00> : vector<4x18xf32>
    %62 = tpu.matmul %59, %61, %cst_56 {dimension_numbers = #tpu.dot_dimension_numbers<[1], [0], [0], [1], [0, 0, 1, 1], [], []>} : vector<4x1xbf16>, vector<1x18xbf16>, vector<4x18xf32> -> vector<4x18xf32>
    %63 = arith.addf %57, %62 : vector<4x18xf32>
    %cst_57 = arith.constant 2.000000e-01 : f32
    %64 = vector.broadcast %cst_57 : f32 to vector<4x18xf32>
    %65 = arith.mulf %64, %63 : vector<4x18xf32>
    %66 = arith.maximumf %63, %65 : vector<4x18xf32>
    %cst_58 = arith.constant 0.000000e+00 : f32
    %67 = vector.broadcast %cst_58 : f32 to vector<4x1xf32>
    %c0_59 = arith.constant 0 : index
    %c0_60 = arith.constant 0 : index
    %68 = vector.load %arg22[%c0_59, %c0_60] : memref<8x20xf32, #tpu.memory_space<vmem>>, vector<4x1xf32>
    tpu.vector_store %arg22[%c0_59, %c0_60], %67 {strides = array<i32>} : memref<8x20xf32, #tpu.memory_space<vmem>>, vector<4x1xf32>,
    %cst_61 = arith.constant 0.000000e+00 : f32
    %69 = vector.broadcast %cst_61 : f32 to vector<4x1xf32>
    %c0_62 = arith.constant 0 : index
    %c19 = arith.constant 19 : index
    %70 = vector.load %arg22[%c0_62, %c19] : memref<8x20xf32, #tpu.memory_space<vmem>>, vector<4x1xf32>
    tpu.vector_store %arg22[%c0_62, %c19], %69 {strides = array<i32>} : memref<8x20xf32, #tpu.memory_space<vmem>>, vector<4x1xf32>,
    %c0_63 = arith.constant 0 : index
    %c1_64 = arith.constant 1 : index
    %71 = vector.load %arg22[%c0_63, %c1_64] : memref<8x20xf32, #tpu.memory_space<vmem>>, vector<4x18xf32>
    tpu.vector_store %arg22[%c0_63, %c1_64], %66 {strides = array<i32>} : memref<8x20xf32, #tpu.memory_space<vmem>>, vector<4x18xf32>,
    %c0_65 = arith.constant 0 : index
    %c0_66 = arith.constant 0 : index
    %72 = vector.load %arg5[%c0_65, %c0_66] : memref<4x1xf32, #tpu.memory_space<vmem>>, vector<4x1xf32>
    %c0_67 = arith.constant 0 : index
    %c0_68 = arith.constant 0 : index
    %c0_69 = arith.constant 0 : index
    %73 = vector.load %arg4[%c0_67, %c0_68, %c0_69] : memref<5x4x4xbf16, #tpu.memory_space<vmem>>, vector<1x4x4xbf16>
    %74 = vector.shape_cast %73 : vector<1x4x4xbf16> to vector<4x4xbf16>
    %c0_70 = arith.constant 0 : index
    %c0_71 = arith.constant 0 : index
    %75 = vector.load %arg22[%c0_70, %c0_71] : memref<8x20xf32, #tpu.memory_space<vmem>>, vector<4x16xf32>
    %76 = arith.truncf %75 : vector<4x16xf32> to vector<4x16xbf16>
    %cst_72 = arith.constant dense<0.000000e+00> : vector<4x16xf32>
    %77 = tpu.matmul %74, %76, %cst_72 {dimension_numbers = #tpu.dot_dimension_numbers<[1], [0], [0], [1], [0, 0, 1, 1], [], []>} : vector<4x4xbf16>, vector<4x16xbf16>, vector<4x16xf32> -> vector<4x16xf32>
    %78 = vector.broadcast %72 : vector<4x1xf32> to vector<4x16xf32>
    %79 = arith.addf %78, %77 : vector<4x16xf32>
    %c1_73 = arith.constant 1 : index
    %c0_74 = arith.constant 0 : index
    %c0_75 = arith.constant 0 : index
    %80 = vector.load %arg4[%c1_73, %c0_74, %c0_75] : memref<5x4x4xbf16, #tpu.memory_space<vmem>>, vector<1x4x4xbf16>
    %81 = vector.shape_cast %80 : vector<1x4x4xbf16> to vector<4x4xbf16>
    %c0_76 = arith.constant 0 : index
    %c1_77 = arith.constant 1 : index
    %82 = vector.load %arg22[%c0_76, %c1_77] : memref<8x20xf32, #tpu.memory_space<vmem>>, vector<4x16xf32>
    %83 = arith.truncf %82 : vector<4x16xf32> to vector<4x16xbf16>
    %cst_78 = arith.constant dense<0.000000e+00> : vector<4x16xf32>
    %84 = tpu.matmul %81, %83, %cst_78 {dimension_numbers = #tpu.dot_dimension_numbers<[1], [0], [0], [1], [0, 0, 1, 1], [], []>} : vector<4x4xbf16>, vector<4x16xbf16>, vector<4x16xf32> -> vector<4x16xf32>
    %85 = arith.addf %79, %84 : vector<4x16xf32>
    %c2_79 = arith.constant 2 : index
    %c0_80 = arith.constant 0 : index
    %c0_81 = arith.constant 0 : index
    %86 = vector.load %arg4[%c2_79, %c0_80, %c0_81] : memref<5x4x4xbf16, #tpu.memory_space<vmem>>, vector<1x4x4xbf16>
    %87 = vector.shape_cast %86 : vector<1x4x4xbf16> to vector<4x4xbf16>
    %c0_82 = arith.constant 0 : index
    %c2_83 = arith.constant 2 : index
    %88 = vector.load %arg22[%c0_82, %c2_83] : memref<8x20xf32, #tpu.memory_space<vmem>>, vector<4x16xf32>
    %89 = arith.truncf %88 : vector<4x16xf32> to vector<4x16xbf16>
    %cst_84 = arith.constant dense<0.000000e+00> : vector<4x16xf32>
    %90 = tpu.matmul %87, %89, %cst_84 {dimension_numbers = #tpu.dot_dimension_numbers<[1], [0], [0], [1], [0, 0, 1, 1], [], []>} : vector<4x4xbf16>, vector<4x16xbf16>, vector<4x16xf32> -> vector<4x16xf32>
    %91 = arith.addf %85, %90 : vector<4x16xf32>
    %c3_85 = arith.constant 3 : index
    %c0_86 = arith.constant 0 : index
    %c0_87 = arith.constant 0 : index
    %92 = vector.load %arg4[%c3_85, %c0_86, %c0_87] : memref<5x4x4xbf16, #tpu.memory_space<vmem>>, vector<1x4x4xbf16>
    %93 = vector.shape_cast %92 : vector<1x4x4xbf16> to vector<4x4xbf16>
    %c0_88 = arith.constant 0 : index
    %c3_89 = arith.constant 3 : index
    %94 = vector.load %arg22[%c0_88, %c3_89] : memref<8x20xf32, #tpu.memory_space<vmem>>, vector<4x16xf32>
    %95 = arith.truncf %94 : vector<4x16xf32> to vector<4x16xbf16>
    %cst_90 = arith.constant dense<0.000000e+00> : vector<4x16xf32>
    %96 = tpu.matmul %93, %95, %cst_90 {dimension_numbers = #tpu.dot_dimension_numbers<[1], [0], [0], [1], [0, 0, 1, 1], [], []>} : vector<4x4xbf16>, vector<4x16xbf16>, vector<4x16xf32> -> vector<4x16xf32>
    %97 = arith.addf %91, %96 : vector<4x16xf32>
    %c4_91 = arith.constant 4 : index
    %c0_92 = arith.constant 0 : index
    %c0_93 = arith.constant 0 : index
    %98 = vector.load %arg4[%c4_91, %c0_92, %c0_93] : memref<5x4x4xbf16, #tpu.memory_space<vmem>>, vector<1x4x4xbf16>
    %99 = vector.shape_cast %98 : vector<1x4x4xbf16> to vector<4x4xbf16>
    %c0_94 = arith.constant 0 : index
    %c4_95 = arith.constant 4 : index
    %100 = vector.load %arg22[%c0_94, %c4_95] : memref<8x20xf32, #tpu.memory_space<vmem>>, vector<4x16xf32>
    %101 = arith.truncf %100 : vector<4x16xf32> to vector<4x16xbf16>
    %cst_96 = arith.constant dense<0.000000e+00> : vector<4x16xf32>
    %102 = tpu.matmul %99, %101, %cst_96 {dimension_numbers = #tpu.dot_dimension_numbers<[1], [0], [0], [1], [0, 0, 1, 1], [], []>} : vector<4x4xbf16>, vector<4x16xbf16>, vector<4x16xf32> -> vector<4x16xf32>
    %103 = arith.addf %97, %102 : vector<4x16xf32>
    %cst_97 = arith.constant 2.000000e-01 : f32
    %104 = vector.broadcast %cst_97 : f32 to vector<4x16xf32>
    %105 = arith.mulf %104, %103 : vector<4x16xf32>
    %106 = arith.maximumf %103, %105 : vector<4x16xf32>
    %cst_98 = arith.constant 0.000000e+00 : f32
    %107 = vector.broadcast %cst_98 : f32 to vector<4x1xf32>
    %c0_99 = arith.constant 0 : index
    %c0_100 = arith.constant 0 : index
    %108 = vector.load %arg23[%c0_99, %c0_100] : memref<8x18xf32, #tpu.memory_space<vmem>>, vector<4x1xf32>
    tpu.vector_store %arg23[%c0_99, %c0_100], %107 {strides = array<i32>} : memref<8x18xf32, #tpu.memory_space<vmem>>, vector<4x1xf32>,
    %cst_101 = arith.constant 0.000000e+00 : f32
    %109 = vector.broadcast %cst_101 : f32 to vector<4x1xf32>
    %c0_102 = arith.constant 0 : index
    %c17 = arith.constant 17 : index
    %110 = vector.load %arg23[%c0_102, %c17] : memref<8x18xf32, #tpu.memory_space<vmem>>, vector<4x1xf32>
    tpu.vector_store %arg23[%c0_102, %c17], %109 {strides = array<i32>} : memref<8x18xf32, #tpu.memory_space<vmem>>, vector<4x1xf32>,
    %c0_103 = arith.constant 0 : index
    %c1_104 = arith.constant 1 : index
    %111 = vector.load %arg23[%c0_103, %c1_104] : memref<8x18xf32, #tpu.memory_space<vmem>>, vector<4x16xf32>
    tpu.vector_store %arg23[%c0_103, %c1_104], %106 {strides = array<i32>} : memref<8x18xf32, #tpu.memory_space<vmem>>, vector<4x16xf32>,
    %c0_105 = arith.constant 0 : index
    %c0_106 = arith.constant 0 : index
    %112 = vector.load %arg7[%c0_105, %c0_106] : memref<4x1xf32, #tpu.memory_space<vmem>>, vector<4x1xf32>
    %c0_107 = arith.constant 0 : index
    %c0_108 = arith.constant 0 : index
    %c0_109 = arith.constant 0 : index
    %113 = vector.load %arg6[%c0_107, %c0_108, %c0_109] : memref<3x4x4xbf16, #tpu.memory_space<vmem>>, vector<1x4x4xbf16>
    %114 = vector.shape_cast %113 : vector<1x4x4xbf16> to vector<4x4xbf16>
    %c0_110 = arith.constant 0 : index
    %c0_111 = arith.constant 0 : index
    %115 = vector.load %arg23[%c0_110, %c0_111] : memref<8x18xf32, #tpu.memory_space<vmem>>, vector<4x16xf32>
    %116 = arith.truncf %115 : vector<4x16xf32> to vector<4x16xbf16>
    %cst_112 = arith.constant dense<0.000000e+00> : vector<4x16xf32>
    %117 = tpu.matmul %114, %116, %cst_112 {dimension_numbers = #tpu.dot_dimension_numbers<[1], [0], [0], [1], [0, 0, 1, 1], [], []>} : vector<4x4xbf16>, vector<4x16xbf16>, vector<4x16xf32> -> vector<4x16xf32>
    %118 = vector.broadcast %112 : vector<4x1xf32> to vector<4x16xf32>
    %119 = arith.addf %118, %117 : vector<4x16xf32>
    %c1_113 = arith.constant 1 : index
    %c0_114 = arith.constant 0 : index
    %c0_115 = arith.constant 0 : index
    %120 = vector.load %arg6[%c1_113, %c0_114, %c0_115] : memref<3x4x4xbf16, #tpu.memory_space<vmem>>, vector<1x4x4xbf16>
    %121 = vector.shape_cast %120 : vector<1x4x4xbf16> to vector<4x4xbf16>
    %c0_116 = arith.constant 0 : index
    %c1_117 = arith.constant 1 : index
    %122 = vector.load %arg23[%c0_116, %c1_117] : memref<8x18xf32, #tpu.memory_space<vmem>>, vector<4x16xf32>
    %123 = arith.truncf %122 : vector<4x16xf32> to vector<4x16xbf16>
    %cst_118 = arith.constant dense<0.000000e+00> : vector<4x16xf32>
    %124 = tpu.matmul %121, %123, %cst_118 {dimension_numbers = #tpu.dot_dimension_numbers<[1], [0], [0], [1], [0, 0, 1, 1], [], []>} : vector<4x4xbf16>, vector<4x16xbf16>, vector<4x16xf32> -> vector<4x16xf32>
    %125 = arith.addf %119, %124 : vector<4x16xf32>
    %c2_119 = arith.constant 2 : index
    %c0_120 = arith.constant 0 : index
    %c0_121 = arith.constant 0 : index
    %126 = vector.load %arg6[%c2_119, %c0_120, %c0_121] : memref<3x4x4xbf16, #tpu.memory_space<vmem>>, vector<1x4x4xbf16>
    %127 = vector.shape_cast %126 : vector<1x4x4xbf16> to vector<4x4xbf16>
    %c0_122 = arith.constant 0 : index
    %c2_123 = arith.constant 2 : index
    %128 = vector.load %arg23[%c0_122, %c2_123] : memref<8x18xf32, #tpu.memory_space<vmem>>, vector<4x16xf32>
    %129 = arith.truncf %128 : vector<4x16xf32> to vector<4x16xbf16>
    %cst_124 = arith.constant dense<0.000000e+00> : vector<4x16xf32>
    %130 = tpu.matmul %127, %129, %cst_124 {dimension_numbers = #tpu.dot_dimension_numbers<[1], [0], [0], [1], [0, 0, 1, 1], [], []>} : vector<4x4xbf16>, vector<4x16xbf16>, vector<4x16xf32> -> vector<4x16xf32>
    %131 = arith.addf %125, %130 : vector<4x16xf32>
    %132 = arith.addf %131, %8 : vector<4x16xf32>
    %133 = arith.truncf %132 : vector<4x16xf32> to vector<4x16xbf16>
    %c0_125 = arith.constant 0 : index
    %c0_126 = arith.constant 0 : index
    %c0_127 = arith.constant 0 : index
    %134 = vector.load %arg16[%c0_125, %c0_126, %c0_127] : memref<1x8x4xbf16, #tpu.memory_space<vmem>>, vector<1x8x4xbf16>
    %135 = vector.shape_cast %134 : vector<1x8x4xbf16> to vector<8x4xbf16>
    %cst_128 = arith.constant dense<0.000000e+00> : vector<8x16xf32>
    %136 = tpu.matmul %135, %133, %cst_128 {dimension_numbers = #tpu.dot_dimension_numbers<[1], [0], [0], [1], [0, 0, 1, 1], [], []>} : vector<8x4xbf16>, vector<4x16xbf16>, vector<8x16xf32> -> vector<8x16xf32>
    %c0_129 = arith.constant 0 : index
    %c0_130 = arith.constant 0 : index
    %137 = vector.load %arg17[%c0_129, %c0_130] : memref<8x1xf32, #tpu.memory_space<vmem>>, vector<8x1xf32>
    %138 = vector.broadcast %137 : vector<8x1xf32> to vector<8x16xf32>
    %139 = arith.addf %136, %138 : vector<8x16xf32>
    %cst_131 = arith.constant 0.000000e+00 : f32
    %140 = vector.broadcast %cst_131 : f32 to vector<4x5xf32>
    %c0_132 = arith.constant 0 : index
    %c0_133 = arith.constant 0 : index
    %141 = vector.load %arg21[%c0_132, %c0_133] : memref<4x25xf32, #tpu.memory_space<vmem>>, vector<4x5xf32>
    tpu.vector_store %arg21[%c0_132, %c0_133], %140 {strides = array<i32>} : memref<4x25xf32, #tpu.memory_space<vmem>>, vector<4x5xf32>,
    %cst_134 = arith.constant 0.000000e+00 : f32
    %142 = vector.broadcast %cst_134 : f32 to vector<4x4xf32>
    %c0_135 = arith.constant 0 : index
    %c21_136 = arith.constant 21 : index
    %143 = vector.load %arg21[%c0_135, %c21_136] : memref<4x25xf32, #tpu.memory_space<vmem>>, vector<4x4xf32>
    tpu.vector_store %arg21[%c0_135, %c21_136], %142 {strides = array<i32>} : memref<4x25xf32, #tpu.memory_space<vmem>>, vector<4x4xf32>,
    %c0_137 = arith.constant 0 : index
    %c5_138 = arith.constant 5 : index
    %144 = vector.load %arg21[%c0_137, %c5_138] : memref<4x25xf32, #tpu.memory_space<vmem>>, vector<4x16xf32>
    tpu.vector_store %arg21[%c0_137, %c5_138], %132 {strides = array<i32>} : memref<4x25xf32, #tpu.memory_space<vmem>>, vector<4x16xf32>,
    %c0_139 = arith.constant 0 : index
    %c0_140 = arith.constant 0 : index
    %145 = vector.load %arg11[%c0_139, %c0_140] : memref<8x1xf32, #tpu.memory_space<vmem>>, vector<8x1xf32>
    %c0_141 = arith.constant 0 : index
    %c0_142 = arith.constant 0 : index
    %c0_143 = arith.constant 0 : index
    %146 = vector.load %arg10[%c0_141, %c0_142, %c0_143] : memref<8x8x4xbf16, #tpu.memory_space<vmem>>, vector<1x8x4xbf16>
    %147 = vector.shape_cast %146 : vector<1x8x4xbf16> to vector<8x4xbf16>
    %c0_144 = arith.constant 0 : index
    %c0_145 = arith.constant 0 : index
    %148 = vector.load %arg21[%c0_144, %c0_145] : memref<4x25xf32, #tpu.memory_space<vmem>>, vector<4x18xf32>
    %149 = arith.truncf %148 : vector<4x18xf32> to vector<4x18xbf16>
    %cst_146 = arith.constant dense<0.000000e+00> : vector<8x18xf32>
    %150 = tpu.matmul %147, %149, %cst_146 {dimension_numbers = #tpu.dot_dimension_numbers<[1], [0], [0], [1], [0, 0, 1, 1], [], []>} : vector<8x4xbf16>, vector<4x18xbf16>, vector<8x18xf32> -> vector<8x18xf32>
    %151 = vector.broadcast %145 : vector<8x1xf32> to vector<8x18xf32>
    %152 = arith.addf %151, %150 : vector<8x18xf32>
    %c1_147 = arith.constant 1 : index
    %c0_148 = arith.constant 0 : index
    %c0_149 = arith.constant 0 : index
    %153 = vector.load %arg10[%c1_147, %c0_148, %c0_149] : memref<8x8x4xbf16, #tpu.memory_space<vmem>>, vector<1x8x4xbf16>
    %154 = vector.shape_cast %153 : vector<1x8x4xbf16> to vector<8x4xbf16>
    %c0_150 = arith.constant 0 : index
    %c1_151 = arith.constant 1 : index
    %155 = vector.load %arg21[%c0_150, %c1_151] : memref<4x25xf32, #tpu.memory_space<vmem>>, vector<4x18xf32>
    %156 = arith.truncf %155 : vector<4x18xf32> to vector<4x18xbf16>
    %cst_152 = arith.constant dense<0.000000e+00> : vector<8x18xf32>
    %157 = tpu.matmul %154, %156, %cst_152 {dimension_numbers = #tpu.dot_dimension_numbers<[1], [0], [0], [1], [0, 0, 1, 1], [], []>} : vector<8x4xbf16>, vector<4x18xbf16>, vector<8x18xf32> -> vector<8x18xf32>
    %158 = arith.addf %152, %157 : vector<8x18xf32>
    %c2_153 = arith.constant 2 : index
    %c0_154 = arith.constant 0 : index
    %c0_155 = arith.constant 0 : index
    %159 = vector.load %arg10[%c2_153, %c0_154, %c0_155] : memref<8x8x4xbf16, #tpu.memory_space<vmem>>, vector<1x8x4xbf16>
    %160 = vector.shape_cast %159 : vector<1x8x4xbf16> to vector<8x4xbf16>
    %c0_156 = arith.constant 0 : index
    %c2_157 = arith.constant 2 : index
    %161 = vector.load %arg21[%c0_156, %c2_157] : memref<4x25xf32, #tpu.memory_space<vmem>>, vector<4x18xf32>
    %162 = arith.truncf %161 : vector<4x18xf32> to vector<4x18xbf16>
    %cst_158 = arith.constant dense<0.000000e+00> : vector<8x18xf32>
    %163 = tpu.matmul %160, %162, %cst_158 {dimension_numbers = #tpu.dot_dimension_numbers<[1], [0], [0], [1], [0, 0, 1, 1], [], []>} : vector<8x4xbf16>, vector<4x18xbf16>, vector<8x18xf32> -> vector<8x18xf32>
    %164 = arith.addf %158, %163 : vector<8x18xf32>
    %c3_159 = arith.constant 3 : index
    %c0_160 = arith.constant 0 : index
    %c0_161 = arith.constant 0 : index
    %165 = vector.load %arg10[%c3_159, %c0_160, %c0_161] : memref<8x8x4xbf16, #tpu.memory_space<vmem>>, vector<1x8x4xbf16>
    %166 = vector.shape_cast %165 : vector<1x8x4xbf16> to vector<8x4xbf16>
    %c0_162 = arith.constant 0 : index
    %c3_163 = arith.constant 3 : index
    %167 = vector.load %arg21[%c0_162, %c3_163] : memref<4x25xf32, #tpu.memory_space<vmem>>, vector<4x18xf32>
    %168 = arith.truncf %167 : vector<4x18xf32> to vector<4x18xbf16>
    %cst_164 = arith.constant dense<0.000000e+00> : vector<8x18xf32>
    %169 = tpu.matmul %166, %168, %cst_164 {dimension_numbers = #tpu.dot_dimension_numbers<[1], [0], [0], [1], [0, 0, 1, 1], [], []>} : vector<8x4xbf16>, vector<4x18xbf16>, vector<8x18xf32> -> vector<8x18xf32>
    %170 = arith.addf %164, %169 : vector<8x18xf32>
    %c4_165 = arith.constant 4 : index
    %c0_166 = arith.constant 0 : index
    %c0_167 = arith.constant 0 : index
    %171 = vector.load %arg10[%c4_165, %c0_166, %c0_167] : memref<8x8x4xbf16, #tpu.memory_space<vmem>>, vector<1x8x4xbf16>
    %172 = vector.shape_cast %171 : vector<1x8x4xbf16> to vector<8x4xbf16>
    %c0_168 = arith.constant 0 : index
    %c4_169 = arith.constant 4 : index
    %173 = vector.load %arg21[%c0_168, %c4_169] : memref<4x25xf32, #tpu.memory_space<vmem>>, vector<4x18xf32>
    %174 = arith.truncf %173 : vector<4x18xf32> to vector<4x18xbf16>
    %cst_170 = arith.constant dense<0.000000e+00> : vector<8x18xf32>
    %175 = tpu.matmul %172, %174, %cst_170 {dimension_numbers = #tpu.dot_dimension_numbers<[1], [0], [0], [1], [0, 0, 1, 1], [], []>} : vector<8x4xbf16>, vector<4x18xbf16>, vector<8x18xf32> -> vector<8x18xf32>
    %176 = arith.addf %170, %175 : vector<8x18xf32>
    %c5_171 = arith.constant 5 : index
    %c0_172 = arith.constant 0 : index
    %c0_173 = arith.constant 0 : index
    %177 = vector.load %arg10[%c5_171, %c0_172, %c0_173] : memref<8x8x4xbf16, #tpu.memory_space<vmem>>, vector<1x8x4xbf16>
    %178 = vector.shape_cast %177 : vector<1x8x4xbf16> to vector<8x4xbf16>
    %c0_174 = arith.constant 0 : index
    %c5_175 = arith.constant 5 : index
    %179 = vector.load %arg21[%c0_174, %c5_175] : memref<4x25xf32, #tpu.memory_space<vmem>>, vector<4x18xf32>
    %180 = arith.truncf %179 : vector<4x18xf32> to vector<4x18xbf16>
    %cst_176 = arith.constant dense<0.000000e+00> : vector<8x18xf32>
    %181 = tpu.matmul %178, %180, %cst_176 {dimension_numbers = #tpu.dot_dimension_numbers<[1], [0], [0], [1], [0, 0, 1, 1], [], []>} : vector<8x4xbf16>, vector<4x18xbf16>, vector<8x18xf32> -> vector<8x18xf32>
    %182 = arith.addf %176, %181 : vector<8x18xf32>
    %c6_177 = arith.constant 6 : index
    %c0_178 = arith.constant 0 : index
    %c0_179 = arith.constant 0 : index
    %183 = vector.load %arg10[%c6_177, %c0_178, %c0_179] : memref<8x8x4xbf16, #tpu.memory_space<vmem>>, vector<1x8x4xbf16>
    %184 = vector.shape_cast %183 : vector<1x8x4xbf16> to vector<8x4xbf16>
    %c0_180 = arith.constant 0 : index
    %c6_181 = arith.constant 6 : index
    %185 = vector.load %arg21[%c0_180, %c6_181] : memref<4x25xf32, #tpu.memory_space<vmem>>, vector<4x18xf32>
    %186 = arith.truncf %185 : vector<4x18xf32> to vector<4x18xbf16>
    %cst_182 = arith.constant dense<0.000000e+00> : vector<8x18xf32>
    %187 = tpu.matmul %184, %186, %cst_182 {dimension_numbers = #tpu.dot_dimension_numbers<[1], [0], [0], [1], [0, 0, 1, 1], [], []>} : vector<8x4xbf16>, vector<4x18xbf16>, vector<8x18xf32> -> vector<8x18xf32>
    %188 = arith.addf %182, %187 : vector<8x18xf32>
    %c7_183 = arith.constant 7 : index
    %c0_184 = arith.constant 0 : index
    %c0_185 = arith.constant 0 : index
    %189 = vector.load %arg10[%c7_183, %c0_184, %c0_185] : memref<8x8x4xbf16, #tpu.memory_space<vmem>>, vector<1x8x4xbf16>
    %190 = vector.shape_cast %189 : vector<1x8x4xbf16> to vector<8x4xbf16>
    %c0_186 = arith.constant 0 : index
    %c7_187 = arith.constant 7 : index
    %191 = vector.load %arg21[%c0_186, %c7_187] : memref<4x25xf32, #tpu.memory_space<vmem>>, vector<4x18xf32>
    %192 = arith.truncf %191 : vector<4x18xf32> to vector<4x18xbf16>
    %cst_188 = arith.constant dense<0.000000e+00> : vector<8x18xf32>
    %193 = tpu.matmul %190, %192, %cst_188 {dimension_numbers = #tpu.dot_dimension_numbers<[1], [0], [0], [1], [0, 0, 1, 1], [], []>} : vector<8x4xbf16>, vector<4x18xbf16>, vector<8x18xf32> -> vector<8x18xf32>
    %194 = arith.addf %188, %193 : vector<8x18xf32>
    %cst_189 = arith.constant 2.000000e-01 : f32
    %195 = vector.broadcast %cst_189 : f32 to vector<8x18xf32>
    %196 = arith.mulf %195, %194 : vector<8x18xf32>
    %197 = arith.maximumf %194, %196 : vector<8x18xf32>
    %cst_190 = arith.constant 0.000000e+00 : f32
    %198 = vector.broadcast %cst_190 : f32 to vector<8x1xf32>
    %c0_191 = arith.constant 0 : index
    %c0_192 = arith.constant 0 : index
    %199 = vector.load %arg22[%c0_191, %c0_192] : memref<8x20xf32, #tpu.memory_space<vmem>>, vector<8x1xf32>
    tpu.vector_store %arg22[%c0_191, %c0_192], %198 {strides = array<i32>} : memref<8x20xf32, #tpu.memory_space<vmem>>, vector<8x1xf32>,
    %cst_193 = arith.constant 0.000000e+00 : f32
    %200 = vector.broadcast %cst_193 : f32 to vector<8x1xf32>
    %c0_194 = arith.constant 0 : index
    %c19_195 = arith.constant 19 : index
    %201 = vector.load %arg22[%c0_194, %c19_195] : memref<8x20xf32, #tpu.memory_space<vmem>>, vector<8x1xf32>
    tpu.vector_store %arg22[%c0_194, %c19_195], %200 {strides = array<i32>} : memref<8x20xf32, #tpu.memory_space<vmem>>, vector<8x1xf32>,
    %c0_196 = arith.constant 0 : index
    %c1_197 = arith.constant 1 : index
    %202 = vector.load %arg22[%c0_196, %c1_197] : memref<8x20xf32, #tpu.memory_space<vmem>>, vector<8x18xf32>
    tpu.vector_store %arg22[%c0_196, %c1_197], %197 {strides = array<i32>} : memref<8x20xf32, #tpu.memory_space<vmem>>, vector<8x18xf32>,
    %c0_198 = arith.constant 0 : index
    %c0_199 = arith.constant 0 : index
    %203 = vector.load %arg13[%c0_198, %c0_199] : memref<8x1xf32, #tpu.memory_space<vmem>>, vector<8x1xf32>
    %c0_200 = arith.constant 0 : index
    %c0_201 = arith.constant 0 : index
    %c0_202 = arith.constant 0 : index
    %204 = vector.load %arg12[%c0_200, %c0_201, %c0_202] : memref<5x8x8xbf16, #tpu.memory_space<vmem>>, vector<1x8x8xbf16>
    %205 = vector.shape_cast %204 : vector<1x8x8xbf16> to vector<8x8xbf16>
    %c0_203 = arith.constant 0 : index
    %c0_204 = arith.constant 0 : index
    %206 = vector.load %arg22[%c0_203, %c0_204] : memref<8x20xf32, #tpu.memory_space<vmem>>, vector<8x16xf32>
    %207 = arith.truncf %206 : vector<8x16xf32> to vector<8x16xbf16>
    %cst_205 = arith.constant dense<0.000000e+00> : vector<8x16xf32>
    %208 = tpu.matmul %205, %207, %cst_205 {dimension_numbers = #tpu.dot_dimension_numbers<[1], [0], [0], [1], [0, 0, 1, 1], [], []>} : vector<8x8xbf16>, vector<8x16xbf16>, vector<8x16xf32> -> vector<8x16xf32>
    %209 = vector.broadcast %203 : vector<8x1xf32> to vector<8x16xf32>
    %210 = arith.addf %209, %208 : vector<8x16xf32>
    %c1_206 = arith.constant 1 : index
    %c0_207 = arith.constant 0 : index
    %c0_208 = arith.constant 0 : index
    %211 = vector.load %arg12[%c1_206, %c0_207, %c0_208] : memref<5x8x8xbf16, #tpu.memory_space<vmem>>, vector<1x8x8xbf16>
    %212 = vector.shape_cast %211 : vector<1x8x8xbf16> to vector<8x8xbf16>
    %c0_209 = arith.constant 0 : index
    %c1_210 = arith.constant 1 : index
    %213 = vector.load %arg22[%c0_209, %c1_210] : memref<8x20xf32, #tpu.memory_space<vmem>>, vector<8x16xf32>
    %214 = arith.truncf %213 : vector<8x16xf32> to vector<8x16xbf16>
    %cst_211 = arith.constant dense<0.000000e+00> : vector<8x16xf32>
    %215 = tpu.matmul %212, %214, %cst_211 {dimension_numbers = #tpu.dot_dimension_numbers<[1], [0], [0], [1], [0, 0, 1, 1], [], []>} : vector<8x8xbf16>, vector<8x16xbf16>, vector<8x16xf32> -> vector<8x16xf32>
    %216 = arith.addf %210, %215 : vector<8x16xf32>
    %c2_212 = arith.constant 2 : index
    %c0_213 = arith.constant 0 : index
    %c0_214 = arith.constant 0 : index
    %217 = vector.load %arg12[%c2_212, %c0_213, %c0_214] : memref<5x8x8xbf16, #tpu.memory_space<vmem>>, vector<1x8x8xbf16>
    %218 = vector.shape_cast %217 : vector<1x8x8xbf16> to vector<8x8xbf16>
    %c0_215 = arith.constant 0 : index
    %c2_216 = arith.constant 2 : index
    %219 = vector.load %arg22[%c0_215, %c2_216] : memref<8x20xf32, #tpu.memory_space<vmem>>, vector<8x16xf32>
    %220 = arith.truncf %219 : vector<8x16xf32> to vector<8x16xbf16>
    %cst_217 = arith.constant dense<0.000000e+00> : vector<8x16xf32>
    %221 = tpu.matmul %218, %220, %cst_217 {dimension_numbers = #tpu.dot_dimension_numbers<[1], [0], [0], [1], [0, 0, 1, 1], [], []>} : vector<8x8xbf16>, vector<8x16xbf16>, vector<8x16xf32> -> vector<8x16xf32>
    %222 = arith.addf %216, %221 : vector<8x16xf32>
    %c3_218 = arith.constant 3 : index
    %c0_219 = arith.constant 0 : index
    %c0_220 = arith.constant 0 : index
    %223 = vector.load %arg12[%c3_218, %c0_219, %c0_220] : memref<5x8x8xbf16, #tpu.memory_space<vmem>>, vector<1x8x8xbf16>
    %224 = vector.shape_cast %223 : vector<1x8x8xbf16> to vector<8x8xbf16>
    %c0_221 = arith.constant 0 : index
    %c3_222 = arith.constant 3 : index
    %225 = vector.load %arg22[%c0_221, %c3_222] : memref<8x20xf32, #tpu.memory_space<vmem>>, vector<8x16xf32>
    %226 = arith.truncf %225 : vector<8x16xf32> to vector<8x16xbf16>
    %cst_223 = arith.constant dense<0.000000e+00> : vector<8x16xf32>
    %227 = tpu.matmul %224, %226, %cst_223 {dimension_numbers = #tpu.dot_dimension_numbers<[1], [0], [0], [1], [0, 0, 1, 1], [], []>} : vector<8x8xbf16>, vector<8x16xbf16>, vector<8x16xf32> -> vector<8x16xf32>
    %228 = arith.addf %222, %227 : vector<8x16xf32>
    %c4_224 = arith.constant 4 : index
    %c0_225 = arith.constant 0 : index
    %c0_226 = arith.constant 0 : index
    %229 = vector.load %arg12[%c4_224, %c0_225, %c0_226] : memref<5x8x8xbf16, #tpu.memory_space<vmem>>, vector<1x8x8xbf16>
    %230 = vector.shape_cast %229 : vector<1x8x8xbf16> to vector<8x8xbf16>
    %c0_227 = arith.constant 0 : index
    %c4_228 = arith.constant 4 : index
    %231 = vector.load %arg22[%c0_227, %c4_228] : memref<8x20xf32, #tpu.memory_space<vmem>>, vector<8x16xf32>
    %232 = arith.truncf %231 : vector<8x16xf32> to vector<8x16xbf16>
    %cst_229 = arith.constant dense<0.000000e+00> : vector<8x16xf32>
    %233 = tpu.matmul %230, %232, %cst_229 {dimension_numbers = #tpu.dot_dimension_numbers<[1], [0], [0], [1], [0, 0, 1, 1], [], []>} : vector<8x8xbf16>, vector<8x16xbf16>, vector<8x16xf32> -> vector<8x16xf32>
    %234 = arith.addf %228, %233 : vector<8x16xf32>
    %cst_230 = arith.constant 2.000000e-01 : f32
    %235 = vector.broadcast %cst_230 : f32 to vector<8x16xf32>
    %236 = arith.mulf %235, %234 : vector<8x16xf32>
    %237 = arith.maximumf %234, %236 : vector<8x16xf32>
    %cst_231 = arith.constant 0.000000e+00 : f32
    %238 = vector.broadcast %cst_231 : f32 to vector<8x1xf32>
    %c0_232 = arith.constant 0 : index
    %c0_233 = arith.constant 0 : index
    %239 = vector.load %arg23[%c0_232, %c0_233] : memref<8x18xf32, #tpu.memory_space<vmem>>, vector<8x1xf32>
    tpu.vector_store %arg23[%c0_232, %c0_233], %238 {strides = array<i32>} : memref<8x18xf32, #tpu.memory_space<vmem>>, vector<8x1xf32>,
    %cst_234 = arith.constant 0.000000e+00 : f32
    %240 = vector.broadcast %cst_234 : f32 to vector<8x1xf32>
    %c0_235 = arith.constant 0 : index
    %c17_236 = arith.constant 17 : index
    %241 = vector.load %arg23[%c0_235, %c17_236] : memref<8x18xf32, #tpu.memory_space<vmem>>, vector<8x1xf32>
    tpu.vector_store %arg23[%c0_235, %c17_236], %240 {strides = array<i32>} : memref<8x18xf32, #tpu.memory_space<vmem>>, vector<8x1xf32>,
    %c0_237 = arith.constant 0 : index
    %c1_238 = arith.constant 1 : index
    %242 = vector.load %arg23[%c0_237, %c1_238] : memref<8x18xf32, #tpu.memory_space<vmem>>, vector<8x16xf32>
    tpu.vector_store %arg23[%c0_237, %c1_238], %237 {strides = array<i32>} : memref<8x18xf32, #tpu.memory_space<vmem>>, vector<8x16xf32>,
    %c0_239 = arith.constant 0 : index
    %c0_240 = arith.constant 0 : index
    %243 = vector.load %arg15[%c0_239, %c0_240] : memref<8x1xf32, #tpu.memory_space<vmem>>, vector<8x1xf32>
    %c0_241 = arith.constant 0 : index
    %c0_242 = arith.constant 0 : index
    %c0_243 = arith.constant 0 : index
    %244 = vector.load %arg14[%c0_241, %c0_242, %c0_243] : memref<3x8x8xbf16, #tpu.memory_space<vmem>>, vector<1x8x8xbf16>
    %245 = vector.shape_cast %244 : vector<1x8x8xbf16> to vector<8x8xbf16>
    %c0_244 = arith.constant 0 : index
    %c0_245 = arith.constant 0 : index
    %246 = vector.load %arg23[%c0_244, %c0_245] : memref<8x18xf32, #tpu.memory_space<vmem>>, vector<8x16xf32>
    %247 = arith.truncf %246 : vector<8x16xf32> to vector<8x16xbf16>
    %cst_246 = arith.constant dense<0.000000e+00> : vector<8x16xf32>
    %248 = tpu.matmul %245, %247, %cst_246 {dimension_numbers = #tpu.dot_dimension_numbers<[1], [0], [0], [1], [0, 0, 1, 1], [], []>} : vector<8x8xbf16>, vector<8x16xbf16>, vector<8x16xf32> -> vector<8x16xf32>
    %249 = vector.broadcast %243 : vector<8x1xf32> to vector<8x16xf32>
    %250 = arith.addf %249, %248 : vector<8x16xf32>
    %c1_247 = arith.constant 1 : index
    %c0_248 = arith.constant 0 : index
    %c0_249 = arith.constant 0 : index
    %251 = vector.load %arg14[%c1_247, %c0_248, %c0_249] : memref<3x8x8xbf16, #tpu.memory_space<vmem>>, vector<1x8x8xbf16>
    %252 = vector.shape_cast %251 : vector<1x8x8xbf16> to vector<8x8xbf16>
    %c0_250 = arith.constant 0 : index
    %c1_251 = arith.constant 1 : index
    %253 = vector.load %arg23[%c0_250, %c1_251] : memref<8x18xf32, #tpu.memory_space<vmem>>, vector<8x16xf32>
    %254 = arith.truncf %253 : vector<8x16xf32> to vector<8x16xbf16>
    %cst_252 = arith.constant dense<0.000000e+00> : vector<8x16xf32>
    %255 = tpu.matmul %252, %254, %cst_252 {dimension_numbers = #tpu.dot_dimension_numbers<[1], [0], [0], [1], [0, 0, 1, 1], [], []>} : vector<8x8xbf16>, vector<8x16xbf16>, vector<8x16xf32> -> vector<8x16xf32>
    %256 = arith.addf %250, %255 : vector<8x16xf32>
    %c2_253 = arith.constant 2 : index
    %c0_254 = arith.constant 0 : index
    %c0_255 = arith.constant 0 : index
    %257 = vector.load %arg14[%c2_253, %c0_254, %c0_255] : memref<3x8x8xbf16, #tpu.memory_space<vmem>>, vector<1x8x8xbf16>
    %258 = vector.shape_cast %257 : vector<1x8x8xbf16> to vector<8x8xbf16>
    %c0_256 = arith.constant 0 : index
    %c2_257 = arith.constant 2 : index
    %259 = vector.load %arg23[%c0_256, %c2_257] : memref<8x18xf32, #tpu.memory_space<vmem>>, vector<8x16xf32>
    %260 = arith.truncf %259 : vector<8x16xf32> to vector<8x16xbf16>
    %cst_258 = arith.constant dense<0.000000e+00> : vector<8x16xf32>
    %261 = tpu.matmul %258, %260, %cst_258 {dimension_numbers = #tpu.dot_dimension_numbers<[1], [0], [0], [1], [0, 0, 1, 1], [], []>} : vector<8x8xbf16>, vector<8x16xbf16>, vector<8x16xf32> -> vector<8x16xf32>
    %262 = arith.addf %256, %261 : vector<8x16xf32>
    %263 = arith.addf %262, %139 : vector<8x16xf32>
    %cst_259 = arith.constant dense<0.000000e+00> : vector<8xf32>
    %264 = vector.multi_reduction <add>, %263, %cst_259 [1] : vector<8x16xf32> to vector<8xf32>
    %265 = vector.shape_cast %264 : vector<8xf32> to vector<8x1xf32>
    %cst_260 = arith.constant 6.250000e-02 : f32
    %266 = vector.broadcast %cst_260 : f32 to vector<8x1xf32>
    %267 = arith.mulf %265, %266 : vector<8x1xf32>
    %c0_261 = arith.constant 0 : index
    %c0_262 = arith.constant 0 : index
    %268 = vector.load %arg18[%c0_261, %c0_262] : memref<3x8xbf16, #tpu.memory_space<vmem>>, vector<3x8xbf16>
    %269 = arith.truncf %267 : vector<8x1xf32> to vector<8x1xbf16>
    %cst_263 = arith.constant dense<0.000000e+00> : vector<3x1xf32>
    %270 = tpu.matmul %268, %269, %cst_263 {dimension_numbers = #tpu.dot_dimension_numbers<[1], [0], [0], [1], [0, 0, 1, 1], [], []>} : vector<3x8xbf16>, vector<8x1xbf16>, vector<3x1xf32> -> vector<3x1xf32>
    %c0_264 = arith.constant 0 : index
    %c0_265 = arith.constant 0 : index
    %271 = vector.load %arg19[%c0_264, %c0_265] : memref<3x1xf32, #tpu.memory_space<vmem>>, vector<3x1xf32>
    %272 = arith.addf %270, %271 : vector<3x1xf32>
    %273 = vector.shape_cast %272 : vector<3x1xf32> to vector<1x3x1xf32>
    %c0_266 = arith.constant 0 : index
    %c0_267 = arith.constant 0 : index
    %c0_268 = arith.constant 0 : index
    %274 = vector.load %arg20[%c0_266, %c0_267, %c0_268] : memref<1x3x1xf32, #tpu.memory_space<vmem>>, vector<1x3x1xf32>
    tpu.vector_store %arg20[%c0_266, %c0_267, %c0_268], %273 {strides = array<i32>} : memref<1x3x1xf32, #tpu.memory_space<vmem>>, vector<1x3x1xf32>,
    return
  }
  func.func @transform_0(%arg0: i32) -> (i32, i32, i32) {
    %c0_i32 = arith.constant 0 : i32
    %c0_i32_0 = arith.constant 0 : i32
    %c0_i32_1 = arith.constant 0 : i32
    return %arg0, %c0_i32, %c0_i32_0 : i32, i32, i32
  }
  func.func @transform_1(%arg0: i32) -> (i32, i32, i32) {
    %c0_i32 = arith.constant 0 : i32
    %c0_i32_0 = arith.constant 0 : i32
    %c0_i32_1 = arith.constant 0 : i32
    %c0_i32_2 = arith.constant 0 : i32
    return %c0_i32, %c0_i32_0, %c0_i32_1 : i32, i32, i32
  }
  func.func @transform_2(%arg0: i32) -> (i32, i32) {
    %c0_i32 = arith.constant 0 : i32
    %c0_i32_0 = arith.constant 0 : i32
    %c0_i32_1 = arith.constant 0 : i32
    return %c0_i32, %c0_i32_0 : i32, i32
  }
  func.func @transform_3(%arg0: i32) -> (i32, i32, i32) {
    %c0_i32 = arith.constant 0 : i32
    %c0_i32_0 = arith.constant 0 : i32
    %c0_i32_1 = arith.constant 0 : i32
    %c0_i32_2 = arith.constant 0 : i32
    return %c0_i32, %c0_i32_0, %c0_i32_1 : i32, i32, i32
  }
  func.func @transform_4(%arg0: i32) -> (i32, i32) {
    %c0_i32 = arith.constant 0 : i32
    %c0_i32_0 = arith.constant 0 : i32
    %c0_i32_1 = arith.constant 0 : i32
    return %c0_i32, %c0_i32_0 : i32, i32
  }
  func.func @transform_5(%arg0: i32) -> (i32, i32, i32) {
    %c0_i32 = arith.constant 0 : i32
    %c0_i32_0 = arith.constant 0 : i32
    %c0_i32_1 = arith.constant 0 : i32
    %c0_i32_2 = arith.constant 0 : i32
    return %c0_i32, %c0_i32_0, %c0_i32_1 : i32, i32, i32
  }
  func.func @transform_6(%arg0: i32) -> (i32, i32) {
    %c0_i32 = arith.constant 0 : i32
    %c0_i32_0 = arith.constant 0 : i32
    %c0_i32_1 = arith.constant 0 : i32
    return %c0_i32, %c0_i32_0 : i32, i32
  }
  func.func @transform_7(%arg0: i32) -> (i32, i32, i32) {
    %c0_i32 = arith.constant 0 : i32
    %c0_i32_0 = arith.constant 0 : i32
    %c0_i32_1 = arith.constant 0 : i32
    %c0_i32_2 = arith.constant 0 : i32
    return %c0_i32, %c0_i32_0, %c0_i32_1 : i32, i32, i32
  }
  func.func @transform_8(%arg0: i32) -> (i32, i32) {
    %c0_i32 = arith.constant 0 : i32
    %c0_i32_0 = arith.constant 0 : i32
    %c0_i32_1 = arith.constant 0 : i32
    return %c0_i32, %c0_i32_0 : i32, i32
  }
  func.func @transform_9(%arg0: i32) -> (i32, i32, i32) {
    %c0_i32 = arith.constant 0 : i32
    %c0_i32_0 = arith.constant 0 : i32
    %c0_i32_1 = arith.constant 0 : i32
    %c0_i32_2 = arith.constant 0 : i32
    return %c0_i32, %c0_i32_0, %c0_i32_1 : i32, i32, i32
  }
  func.func @transform_10(%arg0: i32) -> (i32, i32) {
    %c0_i32 = arith.constant 0 : i32
    %c0_i32_0 = arith.constant 0 : i32
    %c0_i32_1 = arith.constant 0 : i32
    return %c0_i32, %c0_i32_0 : i32, i32
  }
  func.func @transform_11(%arg0: i32) -> (i32, i32, i32) {
    %c0_i32 = arith.constant 0 : i32
    %c0_i32_0 = arith.constant 0 : i32
    %c0_i32_1 = arith.constant 0 : i32
    %c0_i32_2 = arith.constant 0 : i32
    return %c0_i32, %c0_i32_0, %c0_i32_1 : i32, i32, i32
  }
  func.func @transform_12(%arg0: i32) -> (i32, i32) {
    %c0_i32 = arith.constant 0 : i32
    %c0_i32_0 = arith.constant 0 : i32
    %c0_i32_1 = arith.constant 0 : i32
    return %c0_i32, %c0_i32_0 : i32, i32
  }
  func.func @transform_13(%arg0: i32) -> (i32, i32, i32) {
    %c0_i32 = arith.constant 0 : i32
    %c0_i32_0 = arith.constant 0 : i32
    %c0_i32_1 = arith.constant 0 : i32
    %c0_i32_2 = arith.constant 0 : i32
    return %c0_i32, %c0_i32_0, %c0_i32_1 : i32, i32, i32
  }
  func.func @transform_14(%arg0: i32) -> (i32, i32) {
    %c0_i32 = arith.constant 0 : i32
    %c0_i32_0 = arith.constant 0 : i32
    %c0_i32_1 = arith.constant 0 : i32
    return %c0_i32, %c0_i32_0 : i32, i32
  }
  func.func @transform_15(%arg0: i32) -> (i32, i32, i32) {
    %c0_i32 = arith.constant 0 : i32
    %c0_i32_0 = arith.constant 0 : i32
    %c0_i32_1 = arith.constant 0 : i32
    %c0_i32_2 = arith.constant 0 : i32
    return %c0_i32, %c0_i32_0, %c0_i32_1 : i32, i32, i32
  }
  func.func @transform_16(%arg0: i32) -> (i32, i32) {
    %c0_i32 = arith.constant 0 : i32
    %c0_i32_0 = arith.constant 0 : i32
    %c0_i32_1 = arith.constant 0 : i32
    return %c0_i32, %c0_i32_0 : i32, i32
  }
  func.func @transform_17(%arg0: i32) -> (i32, i32) {
    %c0_i32 = arith.constant 0 : i32
    %c0_i32_0 = arith.constant 0 : i32
    %c0_i32_1 = arith.constant 0 : i32
    return %c0_i32, %c0_i32_0 : i32, i32
  }
  func.func @transform_18(%arg0: i32) -> (i32, i32) {
    %c0_i32 = arith.constant 0 : i32
    %c0_i32_0 = arith.constant 0 : i32
    %c0_i32_1 = arith.constant 0 : i32
    return %c0_i32, %c0_i32_0 : i32, i32
  }
  func.func @transform_19(%arg0: i32) -> (i32, i32, i32) {
    %c0_i32 = arith.constant 0 : i32
    %c0_i32_0 = arith.constant 0 : i32
    %c0_i32_1 = arith.constant 0 : i32
    return %arg0, %c0_i32, %c0_i32_0 : i32, i32, i32
  }
}

</mosaic_0001>

<bundles_post_ra>
// kernel: _lambda_.1
= control target key start
LH: loop header
LB: loop body
LE: loop exit
PB: predicated region body
PF: predicated region fallthrough
CT: control target
= control target key end

     0   :  { %s4639_s0 = inlined_call_operand.hbm [shape: f32[2,1,16], index: 0, kind: input, shape index: {}]   ;;  %s4640_s1 = inlined_call_operand.hbm [shape: bf16[8,4,1], index: 1, kind: input, shape index: {}]   ;;  %s4641_s2 = inlined_call_operand.hbm [shape: f32[4,1], index: 2, kind: input, shape index: {}]   ;;  %s4642_s3 = inlined_call_operand.hbm [shape: bf16[5,4,4], index: 3, kind: input, shape index: {}]   ;;  %s4643_s4 = inlined_call_operand.hbm [shape: f32[4,1], index: 4, kind: input, shape index: {}]   ;;  %s4644_s5 = inlined_call_operand.hbm [shape: bf16[3,4,4], index: 5, kind: input, shape index: {}]   ;;  %s4645_s6 = inlined_call_operand.hbm [shape: f32[4,1], index: 6, kind: input, shape index: {}]   ;;  %s4646_s7 = inlined_call_operand.hbm [shape: bf16[1,4,1], index: 7, kind: input, shape index: {}]   ;;  %s4647_s8 = inlined_call_operand.hbm [shape: f32[4,1], index: 8, kind: input, shape index: {}]   ;;  %s4648_s9 = inlined_call_operand.hbm [shape: bf16[8,8,4], index: 9, kind: input, shape index: {}]   ;;  %s4649_s10 = inlined_call_operand.hbm [shape: f32[8,1], index: 10, kind: input, shape index: {}]   ;;  %s4650_s11 = inlined_call_operand.vmem [shape: bf16[5,8,8], index: 11, kind: input, shape index: {}]   ;;  %s4651_s12 = inlined_call_operand.hbm [shape: f32[8,1], index: 12, kind: input, shape index: {}]   ;;  %s4652_s13 = inlined_call_operand.hbm [shape: bf16[3,8,8], index: 13, kind: input, shape index: {}]   ;;  %s4653_s14 = inlined_call_operand.hbm [shape: f32[8,1], index: 14, kind: input, shape index: {}]   ;;  %s4654_s15 = inlined_call_operand.hbm [shape: bf16[1,8,4], index: 15, kind: input, shape index: {}]   ;;  %s4655_s16 = inlined_call_operand.vmem [shape: f32[8,1], index: 16, kind: input, shape index: {}]   ;;  %s4656_s17 = inlined_call_operand.hbm [shape: bf16[3,8], index: 17, kind: input, shape index: {}]   ;;  %s4657_s18 = inlined_call_operand.vmem [shape: f32[3,1], index: 18, kind: input, shape index: {}]   ;;  %s4658_s19 = inlined_call_operand.vmem [shape: f32[2,3,1], index: 19, kind: output, shape index: {}]  }
   0x1   :  { %4665 = sst [smem:[#allocation40_spill]] %s4639_s0 }
   0x2   :  { %4666 = sst [smem:[#allocation41_spill]] %s4640_s1 }
   0x3   :  { %4667 = sst [smem:[#allocation42_spill]] %s4641_s2 }
   0x4   :  { %4668 = sst [smem:[#allocation43_spill]] %s4642_s3 }
   0x5   :  { %4669 = sst [smem:[#allocation44_spill]] %s4643_s4 }
   0x6   :  { %4670 = sst [smem:[#allocation45_spill]] %s4644_s5 }
   0x7   :  { %4671 = sst [smem:[#allocation46_spill]] %s4650_s11 }
   0x8   :  { %4672 = sst [smem:[#allocation47_spill]] %s4655_s16 }
   0x9   :  { %4673 = sst [smem:[#allocation48_spill]] %s4657_s18 }
   0xa   :  { %4674 = sst [smem:[#allocation49_spill]] %s4658_s19 }
   0xb   :  { %24 = vsyncpa [#allocation6], 0 }
   0xc   :  { %26 = vsyncpa [#allocation6 + $0x1], 0 }
   0xd   :  { %27 = vsyncpa [#allocation8], 0 }
   0xe   :  { %28 = vsyncpa [#allocation11], 0 }
   0xf   :  { %29 = vsyncpa [#allocation14], 0 }
  0x10   :  { %30 = vsyncpa [#allocation17], 0 }
  0x11   :  { %31 = vsyncpa [#allocation20], 0 }
  0x12   :  { %32 = vsyncpa [#allocation23], 0 }
  0x13   :  { %33 = vsyncpa [#allocation26], 0 }
  0x14   :  { %34 = vsyncpa [#allocation29], 0  ;;  %s4114_s0 = smov 0   ;;  %s4116_s30 = smov 0  }
  0x15   :  { %s4118_s20 = smov 0   ;;  %s4120_s21 = smov 0  }
  0x16 LB: > { %s3982_s1 = smov [#allocation7]   ;;  %s4135_s2 = sadd.s32 4294967295, %s3980_s21   ;;  %s3980_s21 = sphi %s4120_s21, %s4714_s21   ;;  %s3976_s20 = sphi %s4118_s20, %s4713_s20   ;;  %s3972_s30 = sphi %s4116_s30, %s4712_s30   ;;  %s3968_s0 = sphi %s4114_s0, %s4711_s0  }
  0x17   : > { %s487_s22 = sshll.u32 %s3982_s1, 4  ;;  %p2932_p0 = scmp.ge.s32.totalorder %s3980_s21, 1  ;;  %s488_s22 = int_to_ptr.vmem [resolvable:$true] %s487_s22 }
  0x18   : > { %p4662_p1 = scmp.eq.s32.totalorder %s4135_s2, 0  ;;  %p475_p2 = scmp.lt.s32.totalorder %s3980_s21, 3 }
  0x19   : > { %s3983_s24 = smov [#allocation10]   ;;  %s3984_s26 = smov [#allocation13]  }
  0x1a   : > { %p4140_p3 = pnand %p2932_p0, %p475_p2  ;;  %s511_s25 = sshll.u32 %s3983_s24, 4  ;;  %s4152_s25 = int_to_ptr.vmem [resolvable:$true] %s511_s25 }
  0x1b   : > { %s535_s27 = sshll.u32 %s3984_s26, 4  ;;  %s3507_s29 = scalar_lea.vmem %s488_s22, 256  ;;  %s4154_s27 = int_to_ptr.vmem [resolvable:$true] %s535_s27 }
  0x1c   : > { %s4675_s23 = scalar_select %p4140_p3, 1, 0 }
  0x1d   : > { %p3350_p4 = pneg %p4140_p3  ;;  %p3508_p7 = scmp.ne.s32.totalorder %s488_s22, %s3507_s29 }
  0x1e   : > { %4676 = sst [smem:[#allocation39_spill]] %s4675_s23  ;;  %p3515_p10 = scmp.lt.s32.totalorder %s488_s22, %s488_s22 }
  0x1f   : > { %p4148_p5 = pnand %p3350_p4, %p4662_p1  ;;  %p3516_p11 = scmp.lt.s32.totalorder %s3507_s29, %s3507_s29 }
  0x21   : > { %p4158_p6 = pneg %p4148_p5  ;;  %p3517_p12 = por %p3516_p11, %p3515_p10 }
  0x23   : > { %p3510_p8 = pnand %p3508_p7, %p4158_p6 }
  0x25   : > { %p3511_p9 = pneg %p3510_p8 }
  0x27   : > { %p3518_p13 = pnand %p3517_p12, %p3511_p9 }
  0x29   : > { %3521 = shalt.err (!%p3518_p13)
}
  0x2a   : > { %s3985_s1 = smov 32   ;;  %s3986_s24 = smov 2  }
  0x2b   : > { %s4679_s18 = sld [smem:[#allocation41_spill]]  ;;  %s3533_s16 = scalar_lea.vmem %s4152_s25, 160 }
  0x2c   : > { %p3534_p0 = scmp.ne.s32.totalorder %s4152_s25, %s3533_s16  ;;  %p3541_p7 = scmp.lt.s32.totalorder %s4152_s25, %s4152_s25 }
  0x2d   : > { %p3542_p8 = scmp.lt.s32.totalorder %s3533_s16, %s3533_s16 }
  0x2e   : > { %p3536_p2 = pnand %p3534_p0, %p4158_p6 }
  0x2f   : > { %p3543_p9 = por %p3542_p8, %p3541_p7 }
  0x30   : > { %p3537_p4 = pneg %p3536_p2 }
  0x31   : > { %3353 = dma.hbm_to_vmem [thread:$0]  (!%p4148_p5), %s4679_s18, 256, %s488_s22, [#allocation8], %s3985_s1, %s3985_s1, %s3986_s24  }
  0x32   : > { %p3544_p10 = pnand %p3543_p9, %p3537_p4 }
  0x34   : > { %3547 = shalt.err (!%p3544_p10)
}
  0x35   : > { %s4680_s23 = sld [smem:[#allocation43_spill]]  ;;  %s3559_s18 = scalar_lea.vmem %s4154_s27, 96 }
  0x36   : > { %p3560_p11 = scmp.ne.s32.totalorder %s4154_s27, %s3559_s18  ;;  %p3567_p0 = scmp.lt.s32.totalorder %s4154_s27, %s4154_s27 }
  0x37   : > { %p3568_p2 = scmp.lt.s32.totalorder %s3559_s18, %s3559_s18 }
  0x38   : > { %p3562_p12 = pnand %p3560_p11, %p4158_p6 }
  0x39   : > { %p3569_p4 = por %p3568_p2, %p3567_p0 }
  0x3a   : > { %p3563_p13 = pneg %p3562_p12 }
  0x3b   : > { %3359 = dma.hbm_to_vmem [thread:$0]  (!%p4148_p5), %s4680_s23, 160, %s4152_s25, [#allocation11], %s3985_s1, %s3985_s1, %s3986_s24  }
  0x3c   : > { %p3570_p7 = pnand %p3569_p4, %p3563_p13 }
  0x3e   : > { %3573 = shalt.err (!%p3570_p7)
}
  0x3f   : > { %s4681_s5 = sld [smem:[#allocation45_spill]]  ;;  %s3987_s19 = smov [#allocation16]  }
  0x40   : > { %s560_s22 = sshll.u32 %s3987_s19, 4  ;;  %s3988_s23 = smov [#allocation19]   ;;  %s561_s22 = int_to_ptr.vmem [resolvable:$true] %s560_s22 }
  0x41   : > { %s581_s25 = sshll.u32 %s3988_s23, 4  ;;  %s3585_s26 = scalar_lea.vmem %s561_s22, 32  ;;  %s582_s25 = int_to_ptr.vmem [resolvable:$true] %s581_s25 }
  0x42   : > { %p3586_p8 = scmp.ne.s32.totalorder %s561_s22, %s3585_s26  ;;  %p3593_p11 = scmp.lt.s32.totalorder %s561_s22, %s561_s22 }
  0x43   : > { %p3594_p12 = scmp.lt.s32.totalorder %s3585_s26, %s3585_s26 }
  0x44   : > { %p3588_p9 = pnand %p3586_p8, %p4158_p6 }
  0x45   : > { %3365 = dma.hbm_to_vmem [thread:$0]  (!%p4148_p5), %s4681_s5, 96, %s4154_s27, [#allocation14], %s3985_s1, %s3985_s1, %s3986_s24  }
  0x46   : > { %p3589_p10 = pneg %p3588_p9  ;;  %p3595_p13 = por %p3594_p12, %p3593_p11 }
  0x48   : > { %p3596_p0 = pnand %p3595_p13, %p3589_p10 }
  0x4a   : > { %3599 = shalt.err (!%p3596_p0)
}
  0x4b   : > { %3371 = dma.hbm_to_vmem [thread:$0]  (!%p4148_p5), %s4646_s7, 32, %s561_s22, [#allocation17]  }
  0x4c   : > { %s3611_s27 = scalar_lea.vmem %s582_s25, 512  ;;  %p3619_p8 = scmp.lt.s32.totalorder %s582_s25, %s582_s25 }
  0x4d   : > { %p3612_p2 = scmp.ne.s32.totalorder %s582_s25, %s3611_s27  ;;  %p3620_p9 = scmp.lt.s32.totalorder %s3611_s27, %s3611_s27 }
  0x4f   : > { %p3614_p4 = pnand %p3612_p2, %p4158_p6  ;;  %p3621_p1 = por %p3620_p9, %p3619_p8 }
  0x51   : > { %p3615_p7 = pneg %p3614_p4 }
  0x53   : > { %p3622_p3 = pnand %p3621_p1, %p3615_p7 }
  0x55   : > { %3625 = shalt.err (!%p3622_p3)
}
  0x56   : > { %s3989_s1 = smov 64   ;;  %s3990_s24 = smov 4  }
  0x57   : > { %3377 = dma.hbm_to_vmem [thread:$0]  (!%p4148_p5), %s4648_s9, 512, %s582_s25, [#allocation20], %s3989_s1, %s3989_s1, %s3990_s24  }
  0x58   : > { %s3991_s19 = smov [#allocation22]   ;;  %s3992_s23 = smov [#allocation25]  }
  0x59   : > { %s609_s22 = sshll.u32 %s3991_s19, 4  ;;  %s633_s26 = sshll.u32 %s3992_s23, 4  ;;  %s610_s22 = int_to_ptr.vmem [resolvable:$true] %s609_s22  ;;  %s634_s26 = int_to_ptr.vmem [resolvable:$true] %s633_s26 }
  0x5a   : > { %s3637_s29 = scalar_lea.vmem %s610_s22, 128  ;;  %p3645_p11 = scmp.lt.s32.totalorder %s610_s22, %s610_s22 }
  0x5b   : > { %p3638_p1 = scmp.ne.s32.totalorder %s610_s22, %s3637_s29  ;;  %p3646_p12 = scmp.lt.s32.totalorder %s3637_s29, %s3637_s29 }
  0x5d   : > { %p3640_p3 = pnand %p3638_p1, %p4158_p6  ;;  %p3647_p13 = por %p3646_p12, %p3645_p11 }
  0x5f   : > { %p3641_p10 = pneg %p3640_p3 }
  0x61   : > { %p3648_p0 = pnand %p3647_p13, %p3641_p10 }
  0x63   : > { %3651 = shalt.err (!%p3648_p0)
}
  0x64   : > { %3383 = dma.hbm_to_vmem [thread:$0]  (!%p4148_p5), %s4651_s12, 128, %s610_s22, [#allocation23]  }
  0x65   : > { %s3663_s25 = scalar_lea.vmem %s634_s26, 128  ;;  %p3671_p8 = scmp.lt.s32.totalorder %s634_s26, %s634_s26 }
  0x66   : > { %p3664_p2 = scmp.ne.s32.totalorder %s634_s26, %s3663_s25  ;;  %p3672_p9 = scmp.lt.s32.totalorder %s3663_s25, %s3663_s25 }
  0x68   : > { %p3666_p4 = pnand %p3664_p2, %p4158_p6  ;;  %p3673_p1 = por %p3672_p9, %p3671_p8 }
  0x6a   : > { %p3667_p7 = pneg %p3666_p4 }
  0x6c   : > { %p3674_p3 = pnand %p3673_p1, %p3667_p7 }
  0x6e   : > { %3677 = shalt.err (!%p3674_p3)
}
  0x6f   : > { %3389 = dma.hbm_to_vmem [thread:$0]  (!%p4148_p5), %s4653_s14, 128, %s634_s26, [#allocation26]  }
  0x70   : > { %s3993_s19 = smov [#allocation9]   ;;  %s3994_s23 = smov [#allocation12]  }
  0x71   : > { %s501_s22 = sshll.u32 %s3993_s19, 4  ;;  %s525_s29 = sshll.u32 %s3994_s23, 4  ;;  %s502_s22 = int_to_ptr.vmem [resolvable:$true] %s501_s22  ;;  %s526_s29 = int_to_ptr.vmem [resolvable:$true] %s525_s29 }
  0x72   : > { %s3689_s18 = scalar_lea.vmem %s502_s22, 64  ;;  %p3697_p13 = scmp.lt.s32.totalorder %s502_s22, %s502_s22 }
  0x73   : > { %p3690_p10 = scmp.ne.s32.totalorder %s502_s22, %s3689_s18  ;;  %p3698_p0 = scmp.lt.s32.totalorder %s3689_s18, %s3689_s18 }
  0x75   : > { %p3692_p11 = pnand %p3690_p10, %p4158_p6  ;;  %p3699_p2 = por %p3698_p0, %p3697_p13 }
  0x77   : > { %p3693_p12 = pneg %p3692_p11 }
  0x79   : > { %p3700_p4 = pnand %p3699_p2, %p3693_p12 }
  0x7b   : > { %3703 = shalt.err (!%p3700_p4)
}
  0x7c   : > { %s4682_s26 = sld [smem:[#allocation42_spill]]  ;;  %s3715_s11 = scalar_lea.vmem %s526_s29, 64 }
  0x7d   : > { %p3716_p7 = scmp.ne.s32.totalorder %s526_s29, %s3715_s11  ;;  %p3723_p1 = scmp.lt.s32.totalorder %s526_s29, %s526_s29 }
  0x7e   : > { %p3724_p3 = scmp.lt.s32.totalorder %s3715_s11, %s3715_s11 }
  0x7f   : > { %p3718_p8 = pnand %p3716_p7, %p4158_p6 }
  0x80   : > { %p3725_p10 = por %p3724_p3, %p3723_p1 }
  0x81   : > { %p3719_p9 = pneg %p3718_p8 }
  0x82   : > { %3356 = dma.hbm_to_vmem [thread:$0]  (!%p4148_p5), %s4682_s26, 64, %s502_s22, [#allocation8]  }
  0x83   : > { %p3726_p11 = pnand %p3725_p10, %p3719_p9 }
  0x85   : > { %3729 = shalt.err (!%p3726_p11)
}
  0x86   : > { %s4683_s4 = sld [smem:[#allocation44_spill]]  ;;  %s3995_s23 = smov [#allocation15]  }
  0x87   : > { %s549_s22 = sshll.u32 %s3995_s23, 4  ;;  %s3996_s18 = smov [#allocation18]   ;;  %s550_s22 = int_to_ptr.vmem [resolvable:$true] %s549_s22 }
  0x88   : > { %s571_s27 = sshll.u32 %s3996_s18, 4  ;;  %s3741_s25 = scalar_lea.vmem %s550_s22, 64  ;;  %s572_s27 = int_to_ptr.vmem [resolvable:$true] %s571_s27 }
  0x89   : > { %p3742_p12 = scmp.ne.s32.totalorder %s550_s22, %s3741_s25  ;;  %p3749_p2 = scmp.lt.s32.totalorder %s550_s22, %s550_s22 }
  0x8a   : > { %p3750_p4 = scmp.lt.s32.totalorder %s3741_s25, %s3741_s25 }
  0x8b   : > { %p3744_p13 = pnand %p3742_p12, %p4158_p6 }
  0x8c   : > { %3362 = dma.hbm_to_vmem [thread:$0]  (!%p4148_p5), %s4683_s4, 64, %s526_s29, [#allocation11]  }
  0x8d   : > { %p3745_p0 = pneg %p3744_p13  ;;  %p3751_p7 = por %p3750_p4, %p3749_p2 }
  0x8f   : > { %p3752_p8 = pnand %p3751_p7, %p3745_p0 }
  0x91   : > { %3755 = shalt.err (!%p3752_p8)
}
  0x92   : > { %3368 = dma.hbm_to_vmem [thread:$0]  (!%p4148_p5), %s4645_s6, 64, %s550_s22, [#allocation14]  }
  0x93   : > { %s3767_s29 = scalar_lea.vmem %s572_s27, 64  ;;  %p3775_p10 = scmp.lt.s32.totalorder %s572_s27, %s572_s27 }
  0x94   : > { %p3768_p9 = scmp.ne.s32.totalorder %s572_s27, %s3767_s29  ;;  %p3776_p11 = scmp.lt.s32.totalorder %s3767_s29, %s3767_s29 }
  0x96   : > { %p3770_p1 = pnand %p3768_p9, %p4158_p6  ;;  %p3777_p12 = por %p3776_p11, %p3775_p10 }
  0x98   : > { %p3771_p3 = pneg %p3770_p1 }
  0x9a   : > { %p3778_p13 = pnand %p3777_p12, %p3771_p3 }
  0x9c   : > { %3781 = shalt.err (!%p3778_p13)
}
  0x9d   : > { %3374 = dma.hbm_to_vmem [thread:$0]  (!%p4148_p5), %s4647_s8, 64, %s572_s27, [#allocation17]  }
  0x9e   : > { %s3997_s23 = smov [#allocation21]   ;;  %s3998_s18 = smov [#allocation24]  }
  0x9f   : > { %s595_s22 = sshll.u32 %s3997_s23, 4  ;;  %s619_s25 = sshll.u32 %s3998_s18, 4  ;;  %s596_s22 = int_to_ptr.vmem [resolvable:$true] %s595_s22  ;;  %s620_s25 = int_to_ptr.vmem [resolvable:$true] %s619_s25 }
  0xa0   : > { %s3793_s26 = scalar_lea.vmem %s596_s22, 128  ;;  %p3801_p7 = scmp.lt.s32.totalorder %s596_s22, %s596_s22 }
  0xa1   : > { %p3794_p0 = scmp.ne.s32.totalorder %s596_s22, %s3793_s26  ;;  %p3802_p8 = scmp.lt.s32.totalorder %s3793_s26, %s3793_s26 }
  0xa3   : > { %p3796_p2 = pnand %p3794_p0, %p4158_p6  ;;  %p3803_p9 = por %p3802_p8, %p3801_p7 }
  0xa5   : > { %p3797_p4 = pneg %p3796_p2 }
  0xa7   : > { %p3804_p1 = pnand %p3803_p9, %p3797_p4 }
  0xa9   : > { %3807 = shalt.err (!%p3804_p1)
}
  0xaa   : > { %3380 = dma.hbm_to_vmem [thread:$0]  (!%p4148_p5), %s4649_s10, 128, %s596_s22, [#allocation20]  }
  0xab   : > { %s3819_s27 = scalar_lea.vmem %s620_s25, 192  ;;  %p3827_p12 = scmp.lt.s32.totalorder %s620_s25, %s620_s25 }
  0xac   : > { %p3820_p3 = scmp.ne.s32.totalorder %s620_s25, %s3819_s27  ;;  %p3828_p13 = scmp.lt.s32.totalorder %s3819_s27, %s3819_s27 }
  0xae   : > { %p3822_p10 = pnand %p3820_p3, %p4158_p6  ;;  %p3829_p0 = por %p3828_p13, %p3827_p12 }
  0xb0   : > { %p3823_p11 = pneg %p3822_p10 }
  0xb2   : > { %p3830_p2 = pnand %p3829_p0, %p3823_p11 }
  0xb4   : > { %3833 = shalt.err (!%p3830_p2)
}
  0xb5   : > { %3386 = dma.hbm_to_vmem [thread:$0]  (!%p4148_p5), %s4652_s13, 192, %s620_s25, [#allocation23], %s3989_s1, %s3989_s1, %s3990_s24  }
  0xb6   : > { %s3999_s23 = smov [#allocation27]   ;;  %s4000_s18 = smov [#allocation28]  }
  0xb7   : > { %s644_s22 = sshll.u32 %s3999_s23, 4  ;;  %s658_s26 = sshll.u32 %s4000_s18, 4  ;;  %s645_s22 = int_to_ptr.vmem [resolvable:$true] %s644_s22  ;;  %s659_s26 = int_to_ptr.vmem [resolvable:$true] %s658_s26 }
  0xb8   : > { %s3845_s11 = scalar_lea.vmem %s645_s22, 64  ;;  %p3853_p9 = scmp.lt.s32.totalorder %s645_s22, %s645_s22 }
  0xb9   : > { %p3846_p4 = scmp.ne.s32.totalorder %s645_s22, %s3845_s11  ;;  %p3854_p1 = scmp.lt.s32.totalorder %s3845_s11, %s3845_s11 }
  0xbb   : > { %p3848_p7 = pnand %p3846_p4, %p4158_p6  ;;  %p3855_p3 = por %p3854_p1, %p3853_p9 }
  0xbd   : > { %p3849_p8 = pneg %p3848_p7 }
  0xbf   : > { %p3856_p10 = pnand %p3855_p3, %p3849_p8 }
  0xc1   : > { %3859 = shalt.err (!%p3856_p10)
}
  0xc2   : > { %3392 = dma.hbm_to_vmem [thread:$0]  (!%p4148_p5), %s4654_s15, 64, %s645_s22, [#allocation26]  }
  0xc3   : > { %s3871_s1 = scalar_lea.vmem %s659_s26, 32  ;;  %p3879_p0 = scmp.lt.s32.totalorder %s659_s26, %s659_s26 }
  0xc4   : > { %p3872_p11 = scmp.ne.s32.totalorder %s659_s26, %s3871_s1  ;;  %p3880_p2 = scmp.lt.s32.totalorder %s3871_s1, %s3871_s1 }
  0xc6   : > { %p3874_p12 = pnand %p3872_p11, %p4158_p6  ;;  %p3881_p4 = por %p3880_p2, %p3879_p0 }
  0xc8   : > { %p3875_p13 = pneg %p3874_p12 }
  0xca   : > { %p3882_p7 = pnand %p3881_p4, %p3875_p13 }
  0xcc   : > { %3885 = shalt.err (!%p3882_p7)
}
  0xcd   : > { %3395 = dma.hbm_to_vmem [thread:$0]  (!%p4148_p5), %s4656_s17, 32, %s659_s26, [#allocation29]  }
  0xce   : > { %s4284_s28 = sadd.s32 1, %s3980_s21   ;;  %s47_s16 = sadd.s32 1, %s3976_s20 }
  0xcf   : > { %s44_s3 = ssub.s32 %s3980_s21, %s4284_s28  ;;  %p54_p8 = scmp.ne.s32.totalorder %s3976_s20, %s3972_s30 }
  0xd0   : > { %p45_p6 = scmp.eq.s32.totalorder %s44_s3, 0  ;;  %p55_p9 = scmp.eq.s32.totalorder %s3980_s21, 0 }
  0xd1   : > { %p60_p1 = scmp.ne.s32.totalorder %s3972_s30, %s3968_s0  ;;  %p4684_p10 = scmp.eq.s32.totalorder %s4135_s2, 0 }
  0xd2   : > { %s4295_s19 = scalar_select %p45_p6, %s3976_s20, %s47_s16  }
  0xd3   : > { %p56_p3 = por %p55_p9, %p54_p8  ;;  %p4299_p11 = por %p4684_p10, %p60_p1 }
  0xd4   : > { %p3415_p12 = scmp.lt.s32.totalorder %s3980_s21, 2  ;;  %s672_s22 = sand.u32 1, %s3976_s20  }
  0xd5   : > { %s4685_s23 = scalar_select %p4299_p11, 1, 0 }
  0xd6   : > { %s2949_s18 = sshll.u32 %s3980_s21, 4  ;;  %s675_s26 = scalar_lea.vmem [#allocation5], %s672_s22 }
  0xd7   : > { %s682_s11 = sshll.u32 %s675_s26, 4  ;;  %s4686_s1 = sld [smem:[#allocation40_spill]]  ;;  %s683_s11 = int_to_ptr.vmem [resolvable:$true] %s682_s11 }
  0xd8   : > { %p4311_p5 = pnand %p3415_p12, %p56_p3  ;;  %s673_s25 = scalar_lea.sflag [#allocation6], %s672_s22 }
  0xda   : > { %p3888_p0 = pneg %p4311_p5 }
  0xdd   : > { %s4309_s24 = scalar_lea.hbm %s4686_s1, %s2949_s18  ;;  %s3891_s18 = scalar_lea.hbm %s4686_s1, 32 }
  0xde   : > { %s3886_s3 = scalar_lea.hbm %s4309_s24, 16  ;;  %p3892_p7 = scmp.lt.s32.totalorder %s4309_s24, %s4686_s1 }
  0xdf   : > { %p3887_p13 = scmp.ne.s32.totalorder %s4309_s24, %s3886_s3  ;;  %p3893_p6 = scmp.lt.s32.totalorder %s3891_s18, %s3886_s3 }
  0xe1   : > { %p3889_p2 = pnand %p3888_p0, %p3887_p13  ;;  %p3894_p8 = por %p3893_p6, %p3892_p7 }
  0xe3   : > { %p3890_p4 = pneg %p3889_p2 }
  0xe5   : > { %p3895_p9 = pnand %p3894_p8, %p3890_p4 }
  0xe7   : > { %3898 = shalt.err (!%p3895_p9)
}
  0xe8   : > { %s3899_s27 = scalar_lea.vmem %s683_s11, 16  ;;  %s4001_s22 = smov [#allocation5]  }
  0xe9   : > { %p3900_p1 = scmp.ne.s32.totalorder %s683_s11, %s3899_s27  ;;  %s3904_s4 = sshll.u32 %s4001_s22, 4  ;;  %s3905_s4 = int_to_ptr.vmem [resolvable:$false] %s3904_s4 }
  0xea   : > { %s3906_s5 = scalar_lea.vmem %s3905_s4, 32  ;;  %p3907_p12 = scmp.lt.s32.totalorder %s683_s11, %s3905_s4 }
  0xeb   : > { %p3902_p3 = pnand %p3900_p1, %p3888_p0  ;;  %p3908_p13 = scmp.lt.s32.totalorder %s3906_s5, %s3899_s27 }
  0xed   : > { %p3903_p10 = pneg %p3902_p3  ;;  %p3909_p2 = por %p3908_p13, %p3907_p12 }
  0xef   : > { %p3910_p11 = pnand %p3909_p2, %p3903_p10 }
  0xf1   : > { %3913 = shalt.err (!%p3910_p11)
}
  0xf2   : > { %3399 = dma.hbm_to_vmem [thread:$0]  (!%p4311_p5), %s4309_s24, 16, %s683_s11, %s673_s25  }
  0xf3   : > { %s4688_s3 = sld [smem:[#allocation39_spill]] }
  0xf9   : > { %p4689_p4 = scmp.ne.s32.totalorder %s4688_s3, 0 }
  0xfa   : > { %s693_s21 = sand.u32 (!%p4689_p4), 1, %s3972_s30   ;;  %p4690_p0 = scmp.ne.s32.totalorder (!%p4689_p4), %s4685_s23, 0 }
  0xfb   : > { %691 = sbr.rel (%p4689_p4) target bundleno = 3364 (0xd24), region = 96  ;;  %s694_s16 = scalar_lea.sflag (!%p4689_p4), [#allocation6], %s693_s21 }
  0xfc   : > { %s4332_s18 = scalar_lea.vmem (!%p4689_p4), [#allocation5], %s693_s21 }
 0x100   : > { %3931 = dma.done.wait (%p4690_p0), %s694_s16, 16  }
 0x101   : > { %3933 = vsyncadd (%p4690_p0), %s694_s16, 4294967280  ;;  %p4691_p11 = scmp.eq.s32.totalorder %s4135_s2, 0 }
 0x103   : > { %3935 = dma.done.wait (%p4691_p11), [#allocation8], 320   ;;  %p4692_p7 = pmov %p4691_p11 }
 0x105   : > { %3937 = vsyncadd (%p4692_p7), [#allocation8], 4294966976  ;;  %p4693_p5 = pmov %p4692_p7 }
 0x107   : > { %3939 = dma.done.wait (%p4693_p5), [#allocation11], 224   ;;  %p4694_p6 = pmov %p4693_p5 }
 0x108   : > { %p4695_p8 = pmov %p4693_p5 }
 0x109   : > { %3941 = vsyncadd (%p4694_p6), [#allocation11], 4294967072 }
 0x10a   : > { %3943 = dma.done.wait (%p4695_p8), [#allocation14], 160   ;;  %p4696_p9 = pmov %p4693_p5 }
 0x10b   : > { %p4697_p1 = pmov %p4693_p5 }
 0x10c   : > { %3945 = vsyncadd (%p4696_p9), [#allocation14], 4294967136 }
 0x10d   : > { %3947 = dma.done.wait (%p4697_p1), [#allocation17], 96   ;;  %p4698_p3 = pmov %p4697_p1 }
 0x10e   : > { %p4699_p10 = pmov %p4697_p1 }
 0x10f   : > { %3949 = vsyncadd (%p4698_p3), [#allocation17], 4294967200 }
 0x110   : > { %3951 = dma.done.wait (%p4699_p10), [#allocation20], 640   ;;  %p4700_p12 = pmov %p4697_p1 }
 0x111   : > { %p4701_p13 = pmov %p4697_p1 }
 0x112   : > { %3953 = vsyncadd (%p4700_p12), [#allocation20], 4294966656 }
 0x113   : > { %3955 = dma.done.wait (%p4701_p13), [#allocation23], 320   ;;  %p4702_p2 = pmov %p4697_p1 }
 0x114   : > { %p4703_p4 = pmov %p4697_p1 }
 0x115   : > { %3957 = vsyncadd (%p4702_p2), [#allocation23], 4294966976 }
 0x116   : > { %3959 = dma.done.wait (%p4703_p4), [#allocation26], 192   ;;  %p4704_p0 = pmov %p4697_p1 }
 0x118   : > { %3961 = vsyncadd (%p4704_p0), [#allocation26], 4294967104  ;;  %p4705_p11 = pmov %p4704_p0 }
 0x119   : > { %p4706_p7 = pmov %p4704_p0 }
 0x11a   : > { %3963 = dma.done.wait (%p4705_p11), [#allocation29], 32  }
 0x11b   : > { %3965 = vsyncadd (%p4706_p7), [#allocation29], 4294967264  ;;  %v878_v0 = vlaneseq  ;;  %vm873_vm0 = vcmask 32768   ;;  %vm875_vm1 = vcmask 196776   ;;  %v4002_v1 = vmov 0.0   ;;  %s4004_s4 = smov 5  }
 0x11c   : > { %874 = vst.msk [vmem:[#allocation2] sm:$0x1] %vm873_vm0, %v4002_v1  ;;  %3084 = vmatprep.subr.bf16.mxu1 %v4002_v1  ;;  %3078 = vmatprep.subr.bf16.mxu0 %v4002_v1  ;;  %v4003_v4 = vmov 0   ;;  %v814_v5 = vld [vmem:[%s4332_s18] sm:$0x1]  ;;  %vm827_vm2 = vcmask 1040384  }
 0x11d   : > { %v879_v2 = vshrl.u32 %v878_v0, 7  ;;  %876 = vst.msk [vmem:[#allocation2] sm:$0x1] %vm875_vm1, %v4002_v1  ;;  %3494 = vset.pattern.permute.xlu0 %v4003_v4  ;;  %3495 = vset.pattern.permute.xlu1 %v4003_v4  ;;  %v815_v7 = vpack.c.bf16 %v814_v5, %v814_v5  ;;  %v4376_v8 = vsel %vm827_vm2, 65535, %v4003_v4  ;;  %vm4005_vm3 = vmmov 0   ;;  %s4006_s5 = smov 126  }
 0x11e   : > { %3080 = vmatprep.mubr.msk.bf16.mxu0 %vm4005_vm3, %v4002_v1  ;;  %3086 = vmatprep.mubr.msk.bf16.mxu1 %vm4005_vm3, %v4002_v1  ;;  %v816_v10 = vld [vmem:[#allocation16] sm:$0x3]  ;;  %vm823_vm4 = vcmask 7168   ;;  %vm885_vm5 = vcmask 163880   ;;  %vm1801_vm6 = vcmask 35840   ;;  %s4007_s23 = smov 127  }
 0x11f   : > { %v880_v3 = vsub.s32 0, %v879_v2  ;;  %v831_v9 = vand.u32 %v4376_v8, %v815_v7  ;;  %v888_v15 = vld [vmem:[#allocation7] sm:$0x3]  ;;  %s4008_s11 = smov 125   ;;  %s4009_s24 = smov 124   ;;  %vm1303_vm7 = vcmask 3072  }
 0x120   : > { %s4010_s0 = smov 123   ;;  %s4011_s25 = smov 122   ;;  %v887_v16 = vld [vmem:[#allocation9] sm:$0xf]  ;;  %v944_v25 = vld [vmem:[#allocation7 + $0x2] sm:$0x3] }
 0x121   : > { %v881_v6 = vrot.slane %v814_v5, %v880_v3  ;;  %3079 = vmatpush3.bf16.msra.mxu0 %v831_v9  ;;  %s4012_s26 = smov 121   ;;  %v996_v26 = vld [vmem:[#allocation7 + $0x4] sm:$0x3]  ;;  %v1047_v33 = vld [vmem:[#allocation7 + $0x6] sm:$0x3]  ;;  %vm1305_vm8 = vcmask 158872  }
 0x122   : > { %3090 = vmatprep.subr.bf16.mxu0 %v4002_v1  ;;  %v1098_v34 = vld [vmem:[#allocation7 + $0x8] sm:$0x3]  ;;  %v1149_v38 = vld [vmem:[#allocation7 + $0xa] sm:$0x3]  ;;  %v1200_v39 = vld [vmem:[#allocation7 + $0xc] sm:$0x3] }
 0x123   : > { %882 = vrot.lane.b32.xlu0 %v881_v6, %s4004_s4  ;;  %v1251_v41 = vld [vmem:[#allocation7 + $0xe] sm:$0x3]  ;;  %1304 = vst.msk [vmem:[#allocation3] sm:$0xf] %vm1303_vm7, %v4002_v1  ;;  %1578 = vst.msk [vmem:[#allocation4] sm:$0xf] %vm1303_vm7, %v4002_v1 }
 0x124   : > { %3081 = vmatmul.mubr.msk.bf16.vlgmr.msra.gmra.mxu0 %vm823_vm4, %v816_v10  ;;  %1306 = vst.msk [vmem:[#allocation3] sm:$0xf] %vm1305_vm8, %v4002_v1  ;;  %s4013_s29 = smov 1   ;;  %vm1311_vm9 = vcmask 150536   ;;  %vm1321_vm10 = vcmask 1041408   ;;  %vm1317_vm11 = vcmask 31744  }
 0x125   : > { %3092 = vmatprep.mubr.msk.bf16.mxu0 %vm4005_vm3, %v4002_v1  ;;  %vm1579_vm12 = vcmask 142472   ;;  %vm1585_vm13 = vcmask 134152   ;;  %vm1803_vm14 = vcmask 199848   ;;  %vm1809_vm15 = vcmask 166952   ;;  %s4707_s3 = sld [smem:[#allocation46_spill]]  ;;  %p809_p5 = scmp.lt.s32.totalorder %s4135_s2, 1 }
 0x126   : > { %1580 = vst.msk [vmem:[#allocation4] sm:$0xf] %vm1579_vm12, %v4002_v1  ;;  %vm2228_vm0 = vcmask 162968   ;;  %vm2234_vm1 = vcmask 154632   ;;  %vm2244_vm2 = vcmask 1043456   ;;  %s4708_s22 = sld [smem:[#allocation47_spill]] }
 0x127   : > { %s4716_s2 = smov (!%p809_p5, %s4135_s2), 1  ;;  %s4709_s21 = sld [smem:[#allocation48_spill]]  ;;  %vm2724_vm7 = vcmask 2048  }
 0x195   : > { %v883_v11 = vpop.permute.xlu0 %882 }
 0x196   : > { %886 = vst.msk [vmem:[#allocation2] sm:$0x1] %vm885_vm5, %v883_v11  ;;  %vm2502_vm5 = vcmask 146568  }
 0x19d   : > { %v889_v12 = vld [vmem:[#allocation2] sm:$0x1] }
 0x19e   : > { %v890_v13 = vpack.c.bf16 %v889_v12, %v889_v12  ;;  %1802 = vst.msk [vmem:[#allocation2] sm:$0xf] %vm1801_vm6, %v4002_v1  ;;  %vm2508_vm6 = vcmask 138248  }
 0x19f   : > { %1804 = vst.msk [vmem:[#allocation2] sm:$0xf] %vm1803_vm14, %v4002_v1 }
 0x1a0   : > { %997 = vrot.lane.b32.xlu1 %v890_v13, %s4006_s5  ;;  %946 = vrot.lane.b32.xlu0 %v890_v13, %s4007_s23  ;;  %v895_v14 = vand.u32 %v890_v13, %v4376_v8 }
 0x1a2   : > { %3085 = vmatpush3.bf16.msra.mxu1 %v895_v14 }
 0x1a3   : > { %3096 = vmatprep.subr.bf16.mxu1 %v4002_v1 }
 0x1a4   : > { %1048 = vrot.lane.b32.xlu1 %v890_v13, %s4008_s11  ;;  %1099 = vrot.lane.b32.xlu0 %v890_v13, %s4009_s24 }
 0x1a5   : > { %3087 = vmatmul.mubr.msk.bf16.vlgmr.msra.gmra.mxu1 %vm823_vm4, %v888_v15 }
 0x1a6   : > { %3098 = vmatprep.mubr.msk.bf16.mxu1 %vm4005_vm3, %v4002_v1 }
 0x1a8   : > { %1150 = vrot.lane.b32.xlu1 %v890_v13, %s4010_s0  ;;  %1201 = vrot.lane.b32.xlu0 %v890_v13, %s4011_s25 }
 0x1ac   : > { %1252 = vrot.lane.b32.xlu1 %v890_v13, %s4012_s26  ;;  %939 = vperm.xlu0 %3494, %v887_v16  }
 0x1e4   : > { %v4400_v17 = vpop.f32.mrf.mxu0 }
 0x1e6   : > { %v3082_v18 = vpop.f32.mrf.mxu0 }
 0x1e8   : > { %v870_v19 = vpop.f32.mrf.mxu0 }
 0x1ea   : > { %v3083_v20 = vpop.f32.mrf.mxu0 }
 0x212   : > { %v998_v21 = vpop.permute.xlu1 %997  ;;  %v947_v22 = vpop.permute.xlu0 %946 }
 0x213   : > { %v1003_v23 = vand.u32 %v998_v21, %v4376_v8  ;;  %v952_v24 = vand.u32 %v947_v22, %v4376_v8 }
 0x215   : > { %3091 = vmatpush3.bf16.msra.mxu0 %v952_v24  ;;  %3097 = vmatpush3.bf16.msra.mxu1 %v1003_v23 }
 0x216   : > { %v1049_v27 = vpop.permute.xlu1 %1048  ;;  %v1100_v28 = vpop.permute.xlu0 %1099  ;;  %3102 = vmatprep.subr.bf16.mxu0 %v4002_v1  ;;  %3108 = vmatprep.subr.bf16.mxu1 %v4002_v1 }
 0x217   : > { %v1054_v29 = vand.u32 %v1049_v27, %v4376_v8  ;;  %v1105_v30 = vand.u32 %v1100_v28, %v4376_v8  ;;  %v1314_v27 = vld [vmem:[#allocation10] sm:$0x3]  ;;  %v1313_v28 = vld [vmem:[#allocation12] sm:$0xf] }
 0x218   : > { %3093 = vmatmul.mubr.msk.bf16.vlgmr.msra.gmra.mxu0 %vm823_vm4, %v944_v25  ;;  %3099 = vmatmul.mubr.msk.bf16.vlgmr.msra.gmra.mxu1 %vm823_vm4, %v996_v26 }
 0x219   : > { %3103 = vmatpush3.bf16.msra.mxu0 %v1054_v29  ;;  %3109 = vmatpush3.bf16.msra.mxu1 %v1105_v30 }
 0x21a   : > { %3104 = vmatprep.mubr.msk.bf16.mxu0 %vm4005_vm3, %v4002_v1  ;;  %3110 = vmatprep.mubr.msk.bf16.mxu1 %vm4005_vm3, %v4002_v1  ;;  %v1151_v31 = vpop.permute.xlu1 %1150  ;;  %v1202_v32 = vpop.permute.xlu0 %1201 }
 0x21b   : > { %3114 = vmatprep.subr.bf16.mxu0 %v4002_v1  ;;  %3120 = vmatprep.subr.bf16.mxu1 %v4002_v1  ;;  %v1156_v35 = vand.u32 %v1151_v31, %v4376_v8  ;;  %v1207_v36 = vand.u32 %v1202_v32, %v4376_v8 }
 0x21e   : > { %v1253_v37 = vpop.permute.xlu1 %1252 }
 0x21f   : > { %v1258_v40 = vand.u32 %v1253_v37, %v4376_v8 }
 0x220   : > { %3105 = vmatmul.mubr.msk.bf16.vlgmr.msra.gmra.mxu0 %vm823_vm4, %v1047_v33  ;;  %3111 = vmatmul.mubr.msk.bf16.vlgmr.msra.gmra.mxu1 %vm823_vm4, %v1098_v34  ;;  %v1372_v33 = vld [vmem:[#allocation10 + $0x2] sm:$0x3]  ;;  %v1424_v34 = vld [vmem:[#allocation10 + $0x4] sm:$0x3] }
 0x221   : > { %3115 = vmatpush3.bf16.msra.mxu0 %v1156_v35  ;;  %3121 = vmatpush3.bf16.msra.mxu1 %v1207_v36 }
 0x222   : > { %3116 = vmatprep.mubr.msk.bf16.mxu0 %vm4005_vm3, %v4002_v1  ;;  %3122 = vmatprep.mubr.msk.bf16.mxu1 %vm4005_vm3, %v4002_v1 }
 0x223   : > { %3126 = vmatprep.subr.bf16.mxu0 %v4002_v1  ;;  %3132 = vmatprep.subr.bf16.mxu1 %v4002_v1 }
 0x227   : > { %v940_v46 = vpop.permute.xlu0 %939 }
 0x228   : > { %3117 = vmatmul.mubr.msk.bf16.vlgmr.msra.gmra.mxu0 %vm823_vm4, %v1149_v38  ;;  %3123 = vmatmul.mubr.msk.bf16.vlgmr.msra.gmra.mxu1 %vm823_vm4, %v1200_v39  ;;  %v1475_v39 = vld [vmem:[#allocation10 + $0x6] sm:$0x3] }
 0x229   : > { %3127 = vmatpush3.bf16.msra.mxu0 %v1258_v40  ;;  %3128 = vmatprep.mubr.msk.bf16.mxu0 %vm4005_vm3, %v4002_v1  ;;  %v1526_v40 = vld [vmem:[#allocation10 + $0x8] sm:$0x3] }
 0x22a   : > { %3134 = vmatprep.mubr.msk.bf16.mxu1 %vm4005_vm3, %v4002_v1  ;;  %3138 = vmatprep.subr.bf16.mxu0 %v4002_v1 }
 0x230   : > { %3129 = vmatmul.mubr.msk.bf16.vlgmr.msra.gmra.mxu0 %vm823_vm4, %v1251_v41 }
 0x231   : > { %3140 = vmatprep.mubr.msk.bf16.mxu0 %vm4005_vm3, %v4002_v1 }
 0x265   : > { %v931_v42 = vpop.f32.mrf.mxu1 }
 0x266   : > { %v942_v51 = vadd.f32 %v940_v46, %v931_v42 }
 0x267   : > { %v3088_v43 = vpop.f32.mrf.mxu1 }
 0x269   : > { %v934_v44 = vpop.f32.mrf.mxu1 }
 0x26b   : > { %v3089_v45 = vpop.f32.mrf.mxu1 }
 0x2d8   : > { %v988_v47 = vpop.f32.mrf.mxu0  ;;  %v1039_v48 = vpop.f32.mrf.mxu1 }
 0x2d9   : > { %v994_v56 = vadd.f32 %v988_v47, %v942_v51 }
 0x2da   : > { %v3094_v49 = vpop.f32.mrf.mxu0  ;;  %v3100_v50 = vpop.f32.mrf.mxu1 }
 0x2db   : > { %v1045_v61 = vadd.f32 %v1039_v48, %v994_v56 }
 0x2dc   : > { %v991_v52 = vpop.f32.mrf.mxu0  ;;  %v1042_v53 = vpop.f32.mrf.mxu1 }
 0x2de   : > { %v3095_v54 = vpop.f32.mrf.mxu0  ;;  %v3101_v55 = vpop.f32.mrf.mxu1 }
 0x2e0   : > { %v1090_v57 = vpop.f32.mrf.mxu0  ;;  %v1141_v58 = vpop.f32.mrf.mxu1 }
 0x2e1   : > { %v1096_v0 = vadd.f32 %v1090_v57, %v1045_v61 }
 0x2e2   : > { %v3106_v59 = vpop.f32.mrf.mxu0  ;;  %v3112_v60 = vpop.f32.mrf.mxu1 }
 0x2e3   : > { %v1147_v6 = vadd.f32 %v1141_v58, %v1096_v0 }
 0x2e4   : > { %v1093_v62 = vpop.f32.mrf.mxu0  ;;  %v1144_v63 = vpop.f32.mrf.mxu1 }
 0x2e6   : > { %v3107_v2 = vpop.f32.mrf.mxu0  ;;  %v3113_v3 = vpop.f32.mrf.mxu1 }
 0x2e8   : > { %v1192_v4 = vpop.f32.mrf.mxu0  ;;  %v1243_v5 = vpop.f32.mrf.mxu1 }
 0x2e9   : > { %v1198_v9 = vadd.f32 %v1192_v4, %v1147_v6 }
 0x2ea   : > { %v3118_v7 = vpop.f32.mrf.mxu0  ;;  %v3124_v8 = vpop.f32.mrf.mxu1 }
 0x2eb   : > { %v1249_v14 = vadd.f32 %v1243_v5, %v1198_v9 }
 0x2ec   : > { %v1195_v10 = vpop.f32.mrf.mxu0  ;;  %v1246_v11 = vpop.f32.mrf.mxu1 }
 0x2ed   : > { %v817_v10 = vld [vmem:[#allocation18] sm:$0xf]  ;;  %v1587_v11 = vld [vmem:[#allocation15] sm:$0xf] }
 0x2ee   : > { %v3119_v12 = vpop.f32.mrf.mxu0  ;;  %v3125_v13 = vpop.f32.mrf.mxu1 }
 0x2ef   : > { %v1588_v12 = vld [vmem:[#allocation13] sm:$0x3] }
 0x2f0   : > { %v1294_v15 = vpop.f32.mrf.mxu0 }
 0x2f1   : > { %v1300_v16 = vadd.f32 %v1294_v15, %v1249_v14 }
 0x2f2   : > { %v3130_v18 = vpop.f32.mrf.mxu0 }
 0x2f3   : > { %v1301_v19 = vmul.f32 0.2, %v1300_v16  ;;  %v1644_v18 = vld [vmem:[#allocation13 + $0x2] sm:$0x3] }
 0x2f4   : > { %v1297_v20 = vpop.f32.mrf.mxu0 }
 0x2f5   : > { %v1302_v21 = vmax.f32 %v1300_v16, %v1301_v19  ;;  %v1696_v19 = vld [vmem:[#allocation13 + $0x4] sm:$0x3] }
 0x2f6   : > { %v3131_v22 = vpop.f32.mrf.mxu0 }
 0x2f7   : > { %1308 = vrot.lane.b32.xlu1 %v1302_v21, %s4013_s29 }
 0x369   : > { %v1309_v23 = vpop.permute.xlu1 %1308 }
 0x36a   : > { %1312 = vst.msk [vmem:[#allocation3] sm:$0xf] %vm1311_vm9, %v1309_v23 }
 0x371   : > { %v1315_v24 = vld [vmem:[#allocation3] sm:$0xf] }
 0x372   : > { %2227 = vst.msk [vmem:[#allocation3] sm:$0xff] %vm823_vm4, %v4002_v1  ;;  %v1316_v25 = vpack.c.bf16 %v1315_v24, %v1315_v24 }
 0x373   : > { %2229 = vst.msk [vmem:[#allocation3] sm:$0xff] %vm2228_vm0, %v4002_v1 }
 0x374   : > { %1425 = vrot.lane.b32.xlu0 %v1316_v25, %s4006_s5  ;;  %1374 = vrot.lane.b32.xlu1 %v1316_v25, %s4007_s23  ;;  %v1323_v26 = vsel %vm1321_vm10, %v1316_v25, 0 }
 0x375   : > { %3133 = vmatpush3.bf16.msra.mxu1 %v1323_v26 }
 0x376   : > { %3144 = vmatprep.subr.bf16.mxu1 %v4002_v1 }
 0x378   : > { %1527 = vrot.lane.b32.xlu0 %v1316_v25, %s4009_s24  ;;  %1476 = vrot.lane.b32.xlu1 %v1316_v25, %s4008_s11 }
 0x379   : > { %3135 = vmatmul.mubr.msk.bf16.vlgmr.msra.gmra.mxu1 %vm1317_vm11, %v1314_v27 }
 0x37a   : > { %3146 = vmatprep.mubr.msk.bf16.mxu1 %vm4005_vm3, %v4002_v1 }
 0x37c   : > { %1367 = vperm.xlu1 %3495, %v1313_v28  }
 0x3e6   : > { %v1426_v29 = vpop.permute.xlu0 %1425  ;;  %v1375_v30 = vpop.permute.xlu1 %1374 }
 0x3e7   : > { %v1431_v31 = vsel %vm1321_vm10, %v1426_v29, 0  ;;  %v1380_v32 = vsel %vm1321_vm10, %v1375_v30, 0 }
 0x3e8   : > { %3139 = vmatpush3.bf16.msra.mxu0 %v1380_v32  ;;  %3145 = vmatpush3.bf16.msra.mxu1 %v1431_v31 }
 0x3e9   : > { %3150 = vmatprep.subr.bf16.mxu0 %v4002_v1  ;;  %3156 = vmatprep.subr.bf16.mxu1 %v4002_v1 }
 0x3ea   : > { %v1528_v35 = vpop.permute.xlu0 %1527  ;;  %v1477_v36 = vpop.permute.xlu1 %1476 }
 0x3eb   : > { %v1533_v37 = vsel %vm1321_vm10, %v1528_v35, 0  ;;  %v1482_v38 = vsel %vm1321_vm10, %v1477_v36, 0  ;;  %3141 = vmatmul.mubr.msk.bf16.vlgmr.msra.gmra.mxu0 %vm1317_vm11, %v1372_v33  ;;  %3147 = vmatmul.mubr.msk.bf16.vlgmr.msra.gmra.mxu1 %vm1317_vm11, %v1424_v34 }
 0x3ec   : > { %3151 = vmatpush3.bf16.msra.mxu0 %v1482_v38  ;;  %3157 = vmatpush3.bf16.msra.mxu1 %v1533_v37 }
 0x3ed   : > { %3152 = vmatprep.mubr.msk.bf16.mxu0 %vm4005_vm3, %v4002_v1  ;;  %3158 = vmatprep.mubr.msk.bf16.mxu1 %vm4005_vm3, %v4002_v1 }
 0x3ee   : > { %3162 = vmatprep.subr.bf16.mxu0 %v4002_v1  ;;  %3168 = vmatprep.subr.bf16.mxu1 %v4002_v1 }
 0x3f3   : > { %3153 = vmatmul.mubr.msk.bf16.vlgmr.msra.gmra.mxu0 %vm1317_vm11, %v1475_v39  ;;  %3159 = vmatmul.mubr.msk.bf16.vlgmr.msra.gmra.mxu1 %vm1317_vm11, %v1526_v40 }
 0x3f4   : > { %3164 = vmatprep.mubr.msk.bf16.mxu0 %vm4005_vm3, %v4002_v1  ;;  %3170 = vmatprep.mubr.msk.bf16.mxu1 %vm4005_vm3, %v4002_v1 }
 0x3f7   : > { %v1368_v45 = vpop.permute.xlu1 %1367 }
 0x439   : > { %v1359_v41 = vpop.f32.mrf.mxu1 }
 0x43a   : > { %v1370_v48 = vadd.f32 %v1368_v45, %v1359_v41  ;;  %v1748_v41 = vld [vmem:[#allocation27] sm:$0xf]  ;;  %v1812_v45 = vld [vmem:[#allocation19] sm:$0xf] }
 0x43b   : > { %v3136_v42 = vpop.f32.mrf.mxu1 }
 0x43d   : > { %v1362_v43 = vpop.f32.mrf.mxu1 }
 0x43f   : > { %v3137_v44 = vpop.f32.mrf.mxu1 }
 0x4ab   : > { %v1416_v46 = vpop.f32.mrf.mxu0  ;;  %v1467_v47 = vpop.f32.mrf.mxu1 }
 0x4ac   : > { %v1422_v51 = vadd.f32 %v1416_v46, %v1370_v48  ;;  %v1811_v46 = vld [vmem:[#allocation21] sm:$0xff] }
 0x4ad   : > { %v3142_v49 = vpop.f32.mrf.mxu0  ;;  %v3148_v50 = vpop.f32.mrf.mxu1 }
 0x4ae   : > { %v1473_v56 = vadd.f32 %v1467_v47, %v1422_v51 }
 0x4af   : > { %v1419_v52 = vpop.f32.mrf.mxu0  ;;  %v1470_v53 = vpop.f32.mrf.mxu1 }
 0x4b1   : > { %v3143_v54 = vpop.f32.mrf.mxu0  ;;  %v3149_v55 = vpop.f32.mrf.mxu1 }
 0x4b2   : > { %v1868_v55 = vld [vmem:[#allocation19 + $0x4] sm:$0xf] }
 0x4b3   : > { %v1518_v57 = vpop.f32.mrf.mxu0  ;;  %v1569_v58 = vpop.f32.mrf.mxu1 }
 0x4b4   : > { %v1524_v59 = vadd.f32 %v1518_v57, %v1473_v56  ;;  %v1920_v56 = vld [vmem:[#allocation19 + $0x8] sm:$0xf] }
 0x4b5   : > { %v3154_v60 = vpop.f32.mrf.mxu0  ;;  %v3160_v61 = vpop.f32.mrf.mxu1 }
 0x4b6   : > { %v1575_v62 = vadd.f32 %v1569_v58, %v1524_v59 }
 0x4b7   : > { %v1521_v63 = vpop.f32.mrf.mxu0  ;;  %v1572_v0 = vpop.f32.mrf.mxu1 }
 0x4b8   : > { %v1576_v2 = vmul.f32 0.2, %v1575_v62  ;;  %v1971_v63 = vld [vmem:[#allocation19 + $0xc] sm:$0xf]  ;;  %v2022_v0 = vld [vmem:[#allocation19 + $0x10] sm:$0xf] }
 0x4b9   : > { %v3155_v3 = vpop.f32.mrf.mxu0  ;;  %v3161_v4 = vpop.f32.mrf.mxu1 }
 0x4ba   : > { %v1577_v5 = vmax.f32 %v1575_v62, %v1576_v2 }
 0x4bc   : > { %1582 = vrot.lane.b32.xlu0 %v1577_v5, %s4013_s29  ;;  %v2073_v5 = vld [vmem:[#allocation19 + $0x14] sm:$0xf] }
 0x52e   : > { %v1583_v6 = vpop.permute.xlu0 %1582 }
 0x52f   : > { %1586 = vst.msk [vmem:[#allocation4] sm:$0xf] %vm1585_vm13, %v1583_v6  ;;  %v2124_v6 = vld [vmem:[#allocation19 + $0x18] sm:$0xf] }
 0x536   : > { %v1589_v7 = vld [vmem:[#allocation4] sm:$0xf] }
 0x537   : > { %v1590_v8 = vpack.c.bf16 %v1589_v7, %v1589_v7  ;;  %2501 = vst.msk [vmem:[#allocation4] sm:$0xff] %vm823_vm4, %v4002_v1  ;;  %vm2240_vm4 = vcmask 64512  }
 0x538   : > { %2503 = vst.msk [vmem:[#allocation4] sm:$0xff] %vm2502_vm5, %v4002_v1 }
 0x539   : > { %1697 = vrot.lane.b32.xlu0 %v1590_v8, %s4006_s5  ;;  %1646 = vrot.lane.b32.xlu1 %v1590_v8, %s4007_s23  ;;  %v1595_v9 = vsel %vm1321_vm10, %v1590_v8, 0  ;;  %v2175_v8 = vld [vmem:[#allocation19 + $0x1c] sm:$0xf] }
 0x53a   : > { %3163 = vmatpush3.bf16.msra.mxu0 %v1595_v9 }
 0x53b   : > { %3174 = vmatprep.subr.bf16.mxu0 %v4002_v1 }
 0x53d   : > { %820 = vperm.xlu0 %3494, %v817_v10   ;;  %1639 = vperm.xlu1 %3495, %v1587_v11  }
 0x53e   : > { %3165 = vmatmul.mubr.msk.bf16.vlgmr.msra.gmra.mxu0 %vm1317_vm11, %v1588_v12 }
 0x53f   : > { %3176 = vmatprep.mubr.msk.bf16.mxu0 %vm4005_vm3, %v4002_v1 }
 0x5ab   : > { %v1698_v13 = vpop.permute.xlu0 %1697  ;;  %v1647_v14 = vpop.permute.xlu1 %1646 }
 0x5ac   : > { %v1703_v15 = vsel %vm1321_vm10, %v1698_v13, 0  ;;  %v1652_v16 = vsel %vm1321_vm10, %v1647_v14, 0 }
 0x5ad   : > { %3169 = vmatpush3.bf16.msra.mxu1 %v1652_v16  ;;  %3175 = vmatpush3.bf16.msra.mxu0 %v1703_v15 }
 0x5ae   : > { %3180 = vmatprep.subr.bf16.mxu1 %v4002_v1  ;;  %3186 = vmatprep.subr.bf16.mxu0 %v4002_v1 }
 0x5b0   : > { %3171 = vmatmul.mubr.msk.bf16.vlgmr.msra.gmra.mxu1 %vm1317_vm11, %v1644_v18  ;;  %3177 = vmatmul.mubr.msk.bf16.vlgmr.msra.gmra.mxu0 %vm1317_vm11, %v1696_v19 }
 0x5b1   : > { %3188 = vmatprep.mubr.msk.bf16.mxu0 %vm4005_vm3, %v4002_v1  ;;  %3182 = vmatprep.mubr.msk.bf16.mxu1 %vm4005_vm3, %v4002_v1 }
 0x5b8   : > { %v1640_v24 = vpop.permute.xlu1 %1639  ;;  %v821_v25 = vpop.permute.xlu0 %820 }
 0x5b9   : > { %v868_v32 = vadd.f32 %v4400_v17, %v821_v25 }
 0x5fe   : > { %v1631_v20 = vpop.f32.mrf.mxu0 }
 0x5ff   : > { %v1642_v26 = vadd.f32 %v1640_v24, %v1631_v20 }
 0x600   : > { %v3166_v21 = vpop.f32.mrf.mxu0 }
 0x602   : > { %v1634_v22 = vpop.f32.mrf.mxu0 }
 0x604   : > { %v3167_v23 = vpop.f32.mrf.mxu0 }
 0x670   : > { %v1688_v27 = vpop.f32.mrf.mxu1  ;;  %v1739_v28 = vpop.f32.mrf.mxu0 }
 0x671   : > { %v1694_v29 = vadd.f32 %v1688_v27, %v1642_v26 }
 0x672   : > { %v3172_v30 = vpop.f32.mrf.mxu1  ;;  %v3178_v31 = vpop.f32.mrf.mxu0 }
 0x673   : > { %v1745_v33 = vadd.f32 %v1739_v28, %v1694_v29 }
 0x674   : > { %v1691_v34 = vpop.f32.mrf.mxu1  ;;  %v1742_v35 = vpop.f32.mrf.mxu0 }
 0x675   : > { %v1746_v36 = vadd.f32 %v1745_v33, %v868_v32 }
 0x676   : > { %v3173_v37 = vpop.f32.mrf.mxu1  ;;  %v3179_v38 = vpop.f32.mrf.mxu0 }
 0x677   : > { %v1747_v39 = vpack.c.bf16 %v1746_v36, %v1746_v36  ;;  %1806 = vrot.lane.b32.xlu1 %v1746_v36, %s4004_s4  ;;  %s4710_s4 = sld [smem:[#allocation49_spill]] }
 0x679   : > { %v1759_v40 = vsel %vm1321_vm10, %v1747_v39, 0 }
 0x67a   : > { %3181 = vmatpush3.bf16.msra.mxu1 %v1759_v40 }
 0x67b   : > { %3192 = vmatprep.subr.bf16.mxu1 %v4002_v1 }
 0x67d   : > { %3183 = vmatmul.mubr.msk.bf16.vlgmr.msra.gmra.mxu1 %vm1317_vm11, %v1748_v41 }
 0x67e   : > { %3194 = vmatprep.mubr.msk.bf16.mxu1 %vm4005_vm3, %v4002_v1 }
 0x6e9   : > { %v1807_v17 = vpop.permute.xlu1 %1806 }
 0x6ea   : > { %1810 = vst.msk [vmem:[#allocation2] sm:$0xf] %vm1809_vm15, %v1807_v17 }
 0x6f1   : > { %v1813_v42 = vld [vmem:[#allocation2] sm:$0xf] }
 0x6f2   : > { %v1814_v43 = vpack.c.bf16 %v1813_v42, %v1813_v42 }
 0x6f4   : > { %1921 = vrot.lane.b32.xlu1 %v1814_v43, %s4006_s5  ;;  %1870 = vrot.lane.b32.xlu0 %v1814_v43, %s4007_s23  ;;  %v1819_v44 = vsel %vm1321_vm10, %v1814_v43, 0 }
 0x6f5   : > { %3187 = vmatpush3.bf16.msra.mxu0 %v1819_v44 }
 0x6f6   : > { %3198 = vmatprep.subr.bf16.mxu0 %v4002_v1 }
 0x6f8   : > { %2023 = vrot.lane.b32.xlu1 %v1814_v43, %s4009_s24  ;;  %1972 = vrot.lane.b32.xlu0 %v1814_v43, %s4008_s11 }
 0x6f9   : > { %3189 = vmatmul.mubr.msk.bf16.vlgmr.msra.gmra.mxu0 %vm1317_vm11, %v1812_v45 }
 0x6fa   : > { %3200 = vmatprep.mubr.msk.bf16.mxu0 %vm4005_vm3, %v4002_v1 }
 0x6fc   : > { %2125 = vrot.lane.b32.xlu1 %v1814_v43, %s4011_s25  ;;  %2074 = vrot.lane.b32.xlu0 %v1814_v43, %s4010_s0 }
 0x700   : > { %1863 = vperm.xlu1 %3495, %v1811_v46   ;;  %2176 = vrot.lane.b32.xlu0 %v1814_v43, %s4012_s26 }
 0x73d   : > { %v4513_v47 = vpop.f32.mrf.mxu1 }
 0x73f   : > { %v3184_v48 = vpop.f32.mrf.mxu1 }
 0x741   : > { %v1798_v49 = vpop.f32.mrf.mxu1 }
 0x743   : > { %v3185_v50 = vpop.f32.mrf.mxu1 }
 0x766   : > { %v1922_v51 = vpop.permute.xlu1 %1921  ;;  %v1871_v52 = vpop.permute.xlu0 %1870 }
 0x767   : > { %v1927_v53 = vsel %vm1321_vm10, %v1922_v51, 0  ;;  %v1876_v54 = vsel %vm1321_vm10, %v1871_v52, 0 }
 0x768   : > { %3193 = vmatpush3.bf16.msra.mxu1 %v1876_v54  ;;  %3199 = vmatpush3.bf16.msra.mxu0 %v1927_v53 }
 0x769   : > { %3204 = vmatprep.subr.bf16.mxu1 %v4002_v1  ;;  %3210 = vmatprep.subr.bf16.mxu0 %v4002_v1 }
 0x76a   : > { %v2024_v57 = vpop.permute.xlu1 %2023  ;;  %v1973_v58 = vpop.permute.xlu0 %1972 }
 0x76b   : > { %v2029_v59 = vsel %vm1321_vm10, %v2024_v57, 0  ;;  %v1978_v60 = vsel %vm1321_vm10, %v1973_v58, 0  ;;  %3195 = vmatmul.mubr.msk.bf16.vlgmr.msra.gmra.mxu1 %vm1317_vm11, %v1868_v55  ;;  %3201 = vmatmul.mubr.msk.bf16.vlgmr.msra.gmra.mxu0 %vm1317_vm11, %v1920_v56  ;;  %v2237_v57 = vld [vmem:[%s4707_s3] sm:$0xf]  ;;  %v2236_v58 = vld [vmem:[#allocation22] sm:$0xff] }
 0x76c   : > { %3205 = vmatpush3.bf16.msra.mxu1 %v1978_v60  ;;  %3211 = vmatpush3.bf16.msra.mxu0 %v2029_v59 }
 0x76d   : > { %3206 = vmatprep.mubr.msk.bf16.mxu1 %vm4005_vm3, %v4002_v1  ;;  %3212 = vmatprep.mubr.msk.bf16.mxu0 %vm4005_vm3, %v4002_v1 }
 0x76e   : > { %3216 = vmatprep.subr.bf16.mxu1 %v4002_v1  ;;  %3222 = vmatprep.subr.bf16.mxu0 %v4002_v1  ;;  %v2126_v61 = vpop.permute.xlu1 %2125  ;;  %v2075_v62 = vpop.permute.xlu0 %2074 }
 0x76f   : > { %v2131_v2 = vsel %vm1321_vm10, %v2126_v61, 0  ;;  %v2080_v3 = vsel %vm1321_vm10, %v2075_v62, 0 }
 0x772   : > { %v2177_v4 = vpop.permute.xlu0 %2176 }
 0x773   : > { %3207 = vmatmul.mubr.msk.bf16.vlgmr.msra.gmra.mxu1 %vm1317_vm11, %v1971_v63  ;;  %3213 = vmatmul.mubr.msk.bf16.vlgmr.msra.gmra.mxu0 %vm1317_vm11, %v2022_v0  ;;  %v2182_v7 = vsel %vm1321_vm10, %v2177_v4, 0  ;;  %v2994_v63 = vld [vmem:[%s4707_s3 + $0x4] sm:$0xf]  ;;  %v2996_v0 = vld [vmem:[%s4707_s3 + $0x8] sm:$0xf] }
 0x774   : > { %3217 = vmatpush3.bf16.msra.mxu1 %v2080_v3  ;;  %3223 = vmatpush3.bf16.msra.mxu0 %v2131_v2 }
 0x775   : > { %3218 = vmatprep.mubr.msk.bf16.mxu1 %vm4005_vm3, %v4002_v1  ;;  %3224 = vmatprep.mubr.msk.bf16.mxu0 %vm4005_vm3, %v4002_v1 }
 0x776   : > { %3228 = vmatprep.subr.bf16.mxu1 %v4002_v1  ;;  %3234 = vmatprep.subr.bf16.mxu0 %v4002_v1 }
 0x77b   : > { %3219 = vmatmul.mubr.msk.bf16.vlgmr.msra.gmra.mxu1 %vm1317_vm11, %v2073_v5  ;;  %3225 = vmatmul.mubr.msk.bf16.vlgmr.msra.gmra.mxu0 %vm1317_vm11, %v2124_v6  ;;  %v1864_v18 = vpop.permute.xlu1 %1863  ;;  %v2998_v6 = vld [vmem:[%s4707_s3 + $0xc] sm:$0xf] }
 0x77c   : > { %3229 = vmatpush3.bf16.msra.mxu1 %v2182_v7  ;;  %3230 = vmatprep.mubr.msk.bf16.mxu1 %vm4005_vm3, %v4002_v1  ;;  %v3000_v7 = vld [vmem:[%s4707_s3 + $0x10] sm:$0xf] }
 0x77d   : > { %3236 = vmatprep.mubr.msk.bf16.mxu0 %vm4005_vm3, %v4002_v1  ;;  %3240 = vmatprep.subr.bf16.mxu1 %v4002_v1 }
 0x783   : > { %3231 = vmatmul.mubr.msk.bf16.vlgmr.msra.gmra.mxu1 %vm1317_vm11, %v2175_v8 }
 0x784   : > { %3242 = vmatprep.mubr.msk.bf16.mxu1 %vm4005_vm3, %v4002_v1 }
 0x7b9   : > { %v1855_v9 = vpop.f32.mrf.mxu0 }
 0x7ba   : > { %v1866_v21 = vadd.f32 %v1864_v18, %v1855_v9 }
 0x7bb   : > { %v3190_v10 = vpop.f32.mrf.mxu0 }
 0x7bd   : > { %v1858_v11 = vpop.f32.mrf.mxu0 }
 0x7bf   : > { %v3191_v12 = vpop.f32.mrf.mxu0 }
 0x82b   : > { %v1912_v13 = vpop.f32.mrf.mxu1  ;;  %v1963_v14 = vpop.f32.mrf.mxu0 }
 0x82c   : > { %v1918_v24 = vadd.f32 %v1912_v13, %v1866_v21 }
 0x82d   : > { %v3196_v15 = vpop.f32.mrf.mxu1  ;;  %v3202_v16 = vpop.f32.mrf.mxu0 }
 0x82e   : > { %v1969_v29 = vadd.f32 %v1963_v14, %v1918_v24 }
 0x82f   : > { %v1915_v19 = vpop.f32.mrf.mxu1  ;;  %v1966_v20 = vpop.f32.mrf.mxu0 }
 0x831   : > { %v3197_v22 = vpop.f32.mrf.mxu1  ;;  %v3203_v23 = vpop.f32.mrf.mxu0 }
 0x833   : > { %v2014_v25 = vpop.f32.mrf.mxu1  ;;  %v2065_v26 = vpop.f32.mrf.mxu0 }
 0x834   : > { %v2020_v32 = vadd.f32 %v2014_v25, %v1969_v29 }
 0x835   : > { %v3208_v27 = vpop.f32.mrf.mxu1  ;;  %v3214_v28 = vpop.f32.mrf.mxu0 }
 0x836   : > { %v2071_v37 = vadd.f32 %v2065_v26, %v2020_v32 }
 0x837   : > { %v2017_v30 = vpop.f32.mrf.mxu1  ;;  %v2068_v31 = vpop.f32.mrf.mxu0 }
 0x839   : > { %v3209_v33 = vpop.f32.mrf.mxu1  ;;  %v3215_v34 = vpop.f32.mrf.mxu0 }
 0x83b   : > { %v2116_v35 = vpop.f32.mrf.mxu1  ;;  %v2167_v36 = vpop.f32.mrf.mxu0 }
 0x83c   : > { %v2122_v40 = vadd.f32 %v2116_v35, %v2071_v37 }
 0x83d   : > { %v3220_v38 = vpop.f32.mrf.mxu1  ;;  %v3226_v39 = vpop.f32.mrf.mxu0 }
 0x83e   : > { %v2173_v44 = vadd.f32 %v2167_v36, %v2122_v40 }
 0x83f   : > { %v2119_v41 = vpop.f32.mrf.mxu1  ;;  %v2170_v17 = vpop.f32.mrf.mxu0 }
 0x840   : > { %v1749_v41 = vld [vmem:[%s4708_s22] sm:$0xff]  ;;  %v2510_v17 = vld [vmem:[#allocation25] sm:$0xff] }
 0x841   : > { %v3221_v42 = vpop.f32.mrf.mxu1  ;;  %v3227_v43 = vpop.f32.mrf.mxu0 }
 0x842   : > { %v2511_v42 = vld [vmem:[#allocation24] sm:$0xf] }
 0x843   : > { %v2218_v45 = vpop.f32.mrf.mxu1 }
 0x844   : > { %v2224_v46 = vadd.f32 %v2218_v45, %v2173_v44 }
 0x845   : > { %v3232_v48 = vpop.f32.mrf.mxu1 }
 0x846   : > { %v2225_v49 = vmul.f32 0.2, %v2224_v46  ;;  %v2567_v48 = vld [vmem:[#allocation24 + $0x4] sm:$0xf] }
 0x847   : > { %v2221_v50 = vpop.f32.mrf.mxu1 }
 0x848   : > { %v2226_v51 = vmax.f32 %v2224_v46, %v2225_v49  ;;  %v2619_v49 = vld [vmem:[#allocation24 + $0x8] sm:$0xf] }
 0x849   : > { %v3233_v52 = vpop.f32.mrf.mxu1 }
 0x84a   : > { %2231 = vrot.lane.b32.xlu0 %v2226_v51, %s4013_s29 }
 0x8bc   : > { %v2232_v53 = vpop.permute.xlu0 %2231 }
 0x8bd   : > { %2235 = vst.msk [vmem:[#allocation3] sm:$0xff] %vm2234_vm1, %v2232_v53 }
 0x8c4   : > { %v2238_v54 = vld [vmem:[#allocation3] sm:$0xff] }
 0x8c5   : > { %v2239_v55 = vpack.c.bf16 %v2238_v54, %v2238_v54 }
 0x8c7   : > { %2348 = vrot.lane.b32.xlu0 %v2239_v55, %s4006_s5  ;;  %2297 = vrot.lane.b32.xlu1 %v2239_v55, %s4007_s23  ;;  %v2246_v56 = vsel %vm2244_vm2, %v2239_v55, 0 }
 0x8c8   : > { %3235 = vmatpush3.bf16.msra.mxu0 %v2246_v56 }
 0x8c9   : > { %3246 = vmatprep.subr.bf16.mxu0 %v4002_v1 }
 0x8cb   : > { %2450 = vrot.lane.b32.xlu0 %v2239_v55, %s4009_s24  ;;  %2399 = vrot.lane.b32.xlu1 %v2239_v55, %s4008_s11 }
 0x8cc   : > { %3237 = vmatmul.mubr.msk.bf16.vlgmr.msra.gmra.mxu0 %vm2240_vm4, %v2237_v57 }
 0x8cd   : > { %3248 = vmatprep.mubr.msk.bf16.mxu0 %vm4005_vm3, %v4002_v1 }
 0x8cf   : > { %2290 = vperm.xlu1 %3495, %v2236_v58  }
 0x939   : > { %v2349_v59 = vpop.permute.xlu0 %2348  ;;  %v2298_v60 = vpop.permute.xlu1 %2297 }
 0x93a   : > { %v2354_v61 = vsel %vm2244_vm2, %v2349_v59, 0  ;;  %v2303_v62 = vsel %vm2244_vm2, %v2298_v60, 0 }
 0x93b   : > { %3241 = vmatpush3.bf16.msra.mxu1 %v2303_v62  ;;  %3247 = vmatpush3.bf16.msra.mxu0 %v2354_v61 }
 0x93c   : > { %3252 = vmatprep.subr.bf16.mxu1 %v4002_v1  ;;  %3258 = vmatprep.subr.bf16.mxu0 %v4002_v1 }
 0x93d   : > { %v2451_v2 = vpop.permute.xlu0 %2450  ;;  %v2400_v3 = vpop.permute.xlu1 %2399 }
 0x93e   : > { %v2456_v4 = vsel %vm2244_vm2, %v2451_v2, 0  ;;  %v2405_v5 = vsel %vm2244_vm2, %v2400_v3, 0  ;;  %3243 = vmatmul.mubr.msk.bf16.vlgmr.msra.gmra.mxu1 %vm2240_vm4, %v2994_v63  ;;  %3249 = vmatmul.mubr.msk.bf16.vlgmr.msra.gmra.mxu0 %vm2240_vm4, %v2996_v0 }
 0x93f   : > { %3253 = vmatpush3.bf16.msra.mxu1 %v2405_v5  ;;  %3259 = vmatpush3.bf16.msra.mxu0 %v2456_v4 }
 0x940   : > { %3254 = vmatprep.mubr.msk.bf16.mxu1 %vm4005_vm3, %v4002_v1  ;;  %3260 = vmatprep.mubr.msk.bf16.mxu0 %vm4005_vm3, %v4002_v1 }
 0x941   : > { %3264 = vmatprep.subr.bf16.mxu1 %v4002_v1  ;;  %3270 = vmatprep.subr.bf16.mxu0 %v4002_v1 }
 0x946   : > { %3255 = vmatmul.mubr.msk.bf16.vlgmr.msra.gmra.mxu1 %vm2240_vm4, %v2998_v6  ;;  %3261 = vmatmul.mubr.msk.bf16.vlgmr.msra.gmra.mxu0 %vm2240_vm4, %v3000_v7 }
 0x947   : > { %3266 = vmatprep.mubr.msk.bf16.mxu1 %vm4005_vm3, %v4002_v1  ;;  %3272 = vmatprep.mubr.msk.bf16.mxu0 %vm4005_vm3, %v4002_v1 }
 0x94a   : > { %v2291_v12 = vpop.permute.xlu1 %2290 }
 0x98c   : > { %v2282_v8 = vpop.f32.mrf.mxu0 }
 0x98d   : > { %v2293_v15 = vadd.f32 %v2291_v12, %v2282_v8 }
 0x98e   : > { %v3238_v9 = vpop.f32.mrf.mxu0 }
 0x990   : > { %v2285_v10 = vpop.f32.mrf.mxu0 }
 0x991   : > { %v2675_v10 = vld [vmem:[#allocation28] sm:$0x3] }
 0x992   : > { %v3239_v11 = vpop.f32.mrf.mxu0 }
 0x9fe   : > { %v2339_v13 = vpop.f32.mrf.mxu1  ;;  %v2390_v14 = vpop.f32.mrf.mxu0 }
 0x9ff   : > { %v2345_v19 = vadd.f32 %v2339_v13, %v2293_v15 }
 0xa00   : > { %v3244_v16 = vpop.f32.mrf.mxu1  ;;  %v3250_v18 = vpop.f32.mrf.mxu0 }
 0xa01   : > { %v2396_v24 = vadd.f32 %v2390_v14, %v2345_v19 }
 0xa02   : > { %v2342_v20 = vpop.f32.mrf.mxu1  ;;  %v2393_v21 = vpop.f32.mrf.mxu0 }
 0xa04   : > { %v3245_v22 = vpop.f32.mrf.mxu1  ;;  %v3251_v23 = vpop.f32.mrf.mxu0 }
 0xa06   : > { %v2441_v25 = vpop.f32.mrf.mxu1  ;;  %v2492_v26 = vpop.f32.mrf.mxu0 }
 0xa07   : > { %v2447_v27 = vadd.f32 %v2441_v25, %v2396_v24 }
 0xa08   : > { %v3256_v28 = vpop.f32.mrf.mxu1  ;;  %v3262_v29 = vpop.f32.mrf.mxu0 }
 0xa09   : > { %v2498_v30 = vadd.f32 %v2492_v26, %v2447_v27 }
 0xa0a   : > { %v2444_v31 = vpop.f32.mrf.mxu1  ;;  %v2495_v32 = vpop.f32.mrf.mxu0 }
 0xa0b   : > { %v2499_v33 = vmul.f32 0.2, %v2498_v30 }
 0xa0c   : > { %v3257_v34 = vpop.f32.mrf.mxu1  ;;  %v3263_v35 = vpop.f32.mrf.mxu0 }
 0xa0d   : > { %v2500_v36 = vmax.f32 %v2498_v30, %v2499_v33 }
 0xa0f   : > { %2505 = vrot.lane.b32.xlu0 %v2500_v36, %s4013_s29 }
 0xa81   : > { %v2506_v37 = vpop.permute.xlu0 %2505 }
 0xa82   : > { %2509 = vst.msk [vmem:[#allocation4] sm:$0xff] %vm2508_vm6, %v2506_v37 }
 0xa89   : > { %v2512_v38 = vld [vmem:[#allocation4] sm:$0xff] }
 0xa8a   : > { %v2513_v39 = vpack.c.bf16 %v2512_v38, %v2512_v38 }
 0xa8c   : > { %2620 = vrot.lane.b32.xlu0 %v2513_v39, %s4006_s5  ;;  %2569 = vrot.lane.b32.xlu1 %v2513_v39, %s4007_s23  ;;  %v2518_v40 = vsel %vm2244_vm2, %v2513_v39, 0  ;;  %s2966_s5 = sshll.u32 %s4716_s2, 2 }
 0xa8d   : > { %3265 = vmatpush3.bf16.msra.mxu1 %v2518_v40  ;;  %s812_s11 = scalar_lea.vmem %s4710_s4, %s2966_s5 }
 0xa8e   : > { %3276 = vmatprep.subr.bf16.mxu1 %v4002_v1 }
 0xa90   : > { %1752 = vperm.xlu0 %3494, %v1749_v41   ;;  %2562 = vperm.xlu1 %3495, %v2510_v17  }
 0xa91   : > { %3267 = vmatmul.mubr.msk.bf16.vlgmr.msra.gmra.mxu1 %vm2240_vm4, %v2511_v42 }
 0xa92   : > { %3278 = vmatprep.mubr.msk.bf16.mxu1 %vm4005_vm3, %v4002_v1 }
 0xafe   : > { %v2621_v43 = vpop.permute.xlu0 %2620  ;;  %v2570_v44 = vpop.permute.xlu1 %2569 }
 0xaff   : > { %v2626_v45 = vsel %vm2244_vm2, %v2621_v43, 0  ;;  %v2575_v46 = vsel %vm2244_vm2, %v2570_v44, 0 }
 0xb00   : > { %3271 = vmatpush3.bf16.msra.mxu0 %v2575_v46  ;;  %3277 = vmatpush3.bf16.msra.mxu1 %v2626_v45 }
 0xb01   : > { %3282 = vmatprep.subr.bf16.mxu0 %v4002_v1 }
 0xb03   : > { %3273 = vmatmul.mubr.msk.bf16.vlgmr.msra.gmra.mxu0 %vm2240_vm4, %v2567_v48  ;;  %3279 = vmatmul.mubr.msk.bf16.vlgmr.msra.gmra.mxu1 %vm2240_vm4, %v2619_v49 }
 0xb04   : > { %3284 = vmatprep.mubr.msk.bf16.mxu0 %vm4005_vm3, %v4002_v1  ;;  %vm2670_vm3 = vcmask 130048  }
 0xb0b   : > { %v2563_v54 = vpop.permute.xlu1 %2562  ;;  %v1753_v55 = vpop.permute.xlu0 %1752 }
 0xb0c   : > { %v1796_v62 = vadd.f32 %v4513_v47, %v1753_v55  ;;  %v2677_v47 = vld [vmem:[%s4709_s21] sm:$0x7] }
 0xb51   : > { %v2554_v50 = vpop.f32.mrf.mxu1 }
 0xb52   : > { %v2565_v56 = vadd.f32 %v2563_v54, %v2554_v50 }
 0xb53   : > { %v3268_v51 = vpop.f32.mrf.mxu1 }
 0xb55   : > { %v2557_v52 = vpop.f32.mrf.mxu1 }
 0xb57   : > { %v3269_v53 = vpop.f32.mrf.mxu1 }
 0xbc3   : > { %v2611_v57 = vpop.f32.mrf.mxu0  ;;  %v2662_v58 = vpop.f32.mrf.mxu1 }
 0xbc4   : > { %v2617_v59 = vadd.f32 %v2611_v57, %v2565_v56 }
 0xbc5   : > { %v3274_v60 = vpop.f32.mrf.mxu0  ;;  %v3280_v61 = vpop.f32.mrf.mxu1 }
 0xbc6   : > { %v2668_v63 = vadd.f32 %v2662_v58, %v2617_v59 }
 0xbc7   : > { %v2614_v0 = vpop.f32.mrf.mxu0  ;;  %v2665_v2 = vpop.f32.mrf.mxu1 }
 0xbc8   : > { %v2669_v1 = vadd.f32 %v2668_v63, %v1796_v62 }
 0xbc9   : > { %v3275_v3 = vpop.f32.mrf.mxu0  ;;  %v3281_v4 = vpop.f32.mrf.mxu1 }
 0xbca   : > { %v2671_v5 = vsel %vm2670_vm3, %v2669_v1, 0.0 }
 0xbcb   : > { %2672 = vadd.xlane.f32.xlu1 %v2671_v5 }
 0xc54   : > { %v2673_v6 = vpop.xlane.xlu1 %2672 }
 0xc55   : > { %v2674_v7 = vmul.f32 0.0625, %v2673_v6 }
 0xc57   : > { %v2676_v8 = vpack.c.bf16 %v2674_v7, %v2674_v7 }
 0xc59   : > { %v2682_v9 = vsel %vm2244_vm2, %v2676_v8, 0 }
 0xc5a   : > { %3283 = vmatpush3.bf16.msra.mxu0 %v2682_v9 }
 0xc5d   : > { %3285 = vmatmul.mubr.msk.bf16.vlgmr.msra.gmra.mxu0 %vm2240_vm4, %v2675_v10 }
 0xd1d   : > { %v2718_v11 = vpop.f32.mrf.mxu0 }
 0xd1e   : > { %v2719_v12 = vadd.f32 %v2718_v11, %v2677_v47 }
 0xd1f   : > { %v3286_v13 = vpop.f32.mrf.mxu0 }
 0xd20   : > { %2725 = vst.msk [vmem:[%s812_s11] sm:$0x7] %vm2724_vm7, %v2719_v12 }
 0xd21   : > { %v2721_v14 = vpop.f32.mrf.mxu0 }
 0xd23   : > { %v3287_v15 = vpop.f32.mrf.mxu0 }
 0xd24 PF: > { %p37_p6 = scmp.ge.s32.totalorder %s4284_s28, 4   ;;  %s4711_s0 = smov %s3972_s30 }
 0xd25   : > { %s4712_s30 = smov %s3976_s20  ;;  %s4713_s20 = smov %s4295_s19 }
 0xd26   : > { %s4714_s21 = smov %s4284_s28  ;;  %39 = sbr.rel (!%p37_p6) target bundleno = 22 (0x16), region = 222 }
 0xd2b   :  { %2745 = vsyncpa [#allocation6], 1 }
 0xd2c   :  { %2747 = vsyncpa [#allocation6 + $0x1], 1 }
 0xd2d   :  { %2748 = vsyncpa [#allocation8], 1 }
 0xd2e   :  { %2749 = vsyncpa [#allocation11], 1 }
 0xd2f   :  { %2750 = vsyncpa [#allocation14], 1 }
 0xd30   :  { %2751 = vsyncpa [#allocation17], 1 }
 0xd31   :  { %2752 = vsyncpa [#allocation20], 1 }
 0xd32   :  { %2753 = vsyncpa [#allocation23], 1 }
 0xd33   :  { %2754 = vsyncpa [#allocation26], 1 }
 0xd34   :  { %2755 = vsyncpa [#allocation29], 1 }

</bundles_post_ra>
